<compile_context>
chip_gen: v6e
topology: v6e:2x2x1
jax: 0.10.0
libtpu: 0.0.40
codegen_flags: <defaults>
</compile_context>

<pallas_src>
import functools

import jax
import jax.numpy as jnp
from jax.experimental import pallas as pl
from jax.experimental.pallas import tpu as pltpu

HIDDEN = 64


def _mlp_kernel(x_ref, w1_ref, b1_ref, wh_ref, bh_ref, w5_ref, b5_ref, o_ref,
                *, act_dtype):
    x = x_ref[...]                                   # (tm, D) f32
    tm, D = x.shape

    # ---- Layer 1: K = D is tiny -> VPU broadcast-FMA, skip the MXU entirely.
    if D <= 8:
        acc = x[:, 0:1] * w1_ref[0:1, :]
        for d in range(1, D):
            acc = acc + x[:, d:d + 1] * w1_ref[d:d + 1, :]
    else:
        acc = jnp.dot(x, w1_ref[...], preferred_element_type=jnp.float32)
    h = jnp.tanh((acc + b1_ref[...]).astype(act_dtype))           # (tm, H)

    # ---- Layers 2..4: MXU matmuls (f32 accumulation), tanh on the EUP (bf16 on v6e/v7x).
    for k in range(3):                                            # static unroll
        pre = jnp.dot(h, wh_ref[k], preferred_element_type=jnp.float32) + bh_ref[k]
        h = jnp.tanh(pre.astype(act_dtype))

    # ---- Layer 5: (tm,64)@(64,1) as mul + lane reduction (VPU + XLU); produces the
    #      lane-dense (1, tm) output row directly.
    dot5 = jnp.sum(h.astype(jnp.float32) * w5_ref[...], axis=-1)  # (tm,)
    out = dot5.reshape(1, tm) + b5_ref[...]                       # (1, tm)
    o_ref[...] = out.astype(o_ref.dtype)


def _default_use_bf16():
    """bf16 activations only where the VPU/EUP have a bf16 path (v6e / v7x)."""
    try:
        kind = jax.devices()[0].device_kind.lower()
    except Exception:
        return False
    if "v6" in kind or "v7" in kind:
        return True
    return False


def new_planets_forward(x, params, *, tm=256, use_bf16=None):
    """x: (N, nb_dim) float32 -> (N, 1) float32 gravitational potential."""
    if use_bf16 is None:
        use_bf16 = _default_use_bf16()
    act_dtype = jnp.bfloat16 if use_bf16 else jnp.float32

    N, D = x.shape
    assert tm % 128 == 0, "tm must be a multiple of 128 for lane-dense output blocks"

    (w1, b1), (w2, b2), (w3, b3), (w4, b4), (w5, b5) = params
    # Pack hidden-layer params; cast hidden weights to the activation dtype (bf16 on v6e/v7x).
    wh = jnp.stack([w2, w3, w4]).astype(act_dtype)    # (3, H, H)
    bh = jnp.stack([b2, b3, b4])                      # (3, 1, H)  f32
    w5r = w5.reshape(1, HIDDEN)                       # (1, H)     f32 row form
    b5r = b5.reshape(1, 1)                            # (1, 1)     f32

    # Pad N up to a multiple of the row tile (tail rows computed on zeros, sliced off).
    num_tiles = pl.cdiv(N, tm)
    Np = num_tiles * tm
    if Np != N:
        x = jnp.pad(x, ((0, Np - N), (0, 0)))

    kernel = functools.partial(_mlp_kernel, act_dtype=act_dtype)

    out_flat = pl.pallas_call(
        kernel,
        out_shape=jax.ShapeDtypeStruct((1, Np), jnp.float32),
        grid_spec=pltpu.PrefetchScalarGridSpec(
            num_scalar_prefetch=0,
            grid=(num_tiles,),
            in_specs=[
                pl.BlockSpec((tm, D), lambda i: (i, 0)),          # x row-tile
                pl.BlockSpec(w1.shape, lambda i: (0, 0)),          # (D, H)
                pl.BlockSpec(b1.shape, lambda i: (0, 0)),          # (1, H)
                pl.BlockSpec(wh.shape, lambda i: (0, 0, 0)),       # (3, H, H)
                pl.BlockSpec(bh.shape, lambda i: (0, 0, 0)),       # (3, 1, H)
                pl.BlockSpec((1, HIDDEN), lambda i: (0, 0)),       # w5 row
                pl.BlockSpec((1, 1), lambda i: (0, 0)),            # b5
            ],
            # Lane-dense output slab: one (1, tm) block per grid step along the lane axis.
            out_specs=pl.BlockSpec((1, tm), lambda i: (0, i)),
        ),
        compiler_params=pltpu.CompilerParams(
            dimension_semantics=("parallel",)),
    )(x, w1, b1, wh, bh, w5r, b5r)

    return out_flat.reshape(Np, 1)[:N]


def init_params(key, nb_dimensions):
    """Deterministic init mimicking torch.nn.Linear defaults:
    U(-1/sqrt(fan_in), 1/sqrt(fan_in)) for both weight and bias; weights stored (in, out)."""
    dims = [(nb_dimensions, HIDDEN), (HIDDEN, HIDDEN), (HIDDEN, HIDDEN),
            (HIDDEN, HIDDEN), (HIDDEN, 1)]
    params = []
    for (fan_in, fan_out) in dims:
        key, kw, kb = jax.random.split(key, 3)
        bound = 1.0 / jnp.sqrt(jnp.float32(fan_in))
        w = jax.random.uniform(kw, (fan_in, fan_out), jnp.float32, -bound, bound)
        b = jax.random.uniform(kb, (1, fan_out), jnp.float32, -bound, bound)
        params.append((w, b))
    return params


def reference_forward(x, params, act_dtype=jnp.float32):
    """Pure-JAX reference. With act_dtype=bfloat16 it mirrors the kernel's precision path."""
    (w1, b1), (w2, b2), (w3, b3), (w4, b4), (w5, b5) = params
    h = jnp.tanh((x @ w1 + b1).astype(act_dtype))
    for (w, b) in ((w2, b2), (w3, b3), (w4, b4)):
        pre = jnp.dot(h, w.astype(act_dtype),
                      preferred_element_type=jnp.float32) + b
        h = jnp.tanh(pre.astype(act_dtype))
    return jnp.dot(h.astype(jnp.float32), w5,
                   preferred_element_type=jnp.float32) + b5


if __name__ == "__main__":
    key = jax.random.PRNGKey(0)
    nb_dimensions = 2          # planets live in a 2-D plane (see compute_residual)
    N = 600                    # not a multiple of tm -> exercises the padded-tail path

    k_x, k_p = jax.random.split(key)
    x = jax.random.uniform(k_x, (N, nb_dimensions), jnp.float32)
    params = init_params(k_p, nb_dimensions)

    use_bf16 = _default_use_bf16()
    out = new_planets_forward(x, params, tm=256, use_bf16=use_bf16)
    out = jax.block_until_ready(out)
    assert out.shape == (N, 1)

    act_dtype = jnp.bfloat16 if use_bf16 else jnp.float32
    ref_matched = reference_forward(x, params, act_dtype=act_dtype)
    ref_f32 = reference_forward(x, params, act_dtype=jnp.float32)

    tol = 5e-2 if use_bf16 else 1e-4
    max_diff = float(jnp.max(jnp.abs(out - ref_matched)))
    assert jnp.allclose(out, ref_matched, atol=tol, rtol=tol), \
        f"mismatch vs precision-matched reference (max abs diff {max_diff})"
    assert jnp.allclose(out, ref_f32, atol=0.25, rtol=0.25), \
        "gross mismatch vs pure-f32 reference"

    print("KERNEL_OK")
</pallas_src>

<mosaic_0001>
module attributes {stable_mosaic.version = 11 : i64} {
  func.func @_mlp_kernel(%arg0: i32, %arg1: memref<256x2xf32, #tpu.memory_space<vmem>>, %arg2: memref<2x64xf32, #tpu.memory_space<vmem>>, %arg3: memref<1x64xf32, #tpu.memory_space<vmem>>, %arg4: memref<3x64x64xf32, #tpu.memory_space<vmem>>, %arg5: memref<3x1x64xf32, #tpu.memory_space<vmem>>, %arg6: memref<1x64xf32, #tpu.memory_space<vmem>>, %arg7: memref<1x1xf32, #tpu.memory_space<vmem>>, %arg8: memref<1x256xf32, #tpu.memory_space<vmem>>) attributes {dimension_semantics = [#tpu.dimension_semantics<parallel>], iteration_bounds = array<i64: 3>, scalar_prefetch = 0 : i64, scratch_operands = 0 : i64, tpu.core_type = #tpu.core_type<tc>, window_params = [{transform_indices = @transform_0, window_bounds = array<i64: 256, 2>}, {pipeline_mode = #tpu.pipeline_mode<synchronous>, transform_indices = @transform_1, window_bounds = array<i64: 2, 64>}, {pipeline_mode = #tpu.pipeline_mode<synchronous>, transform_indices = @transform_2, window_bounds = array<i64: 1, 64>}, {pipeline_mode = #tpu.pipeline_mode<synchronous>, transform_indices = @transform_3, window_bounds = array<i64: 3, 64, 64>}, {pipeline_mode = #tpu.pipeline_mode<synchronous>, transform_indices = @transform_4, window_bounds = array<i64: 3, 1, 64>}, {pipeline_mode = #tpu.pipeline_mode<synchronous>, transform_indices = @transform_5, window_bounds = array<i64: 1, 64>}, {pipeline_mode = #tpu.pipeline_mode<synchronous>, transform_indices = @transform_6, window_bounds = array<i64: 1, 1>}, {transform_indices = @transform_7, window_bounds = array<i64: 1, 256>}]} {
    %c0 = arith.constant 0 : index
    %c0_0 = arith.constant 0 : index
    %0 = vector.load %arg1[%c0, %c0_0] : memref<256x2xf32, #tpu.memory_space<vmem>>, vector<256x2xf32>
    %1 = vector.extract_strided_slice %0 {offsets = [0, 0], sizes = [256, 1], strides = [1, 1]} : vector<256x2xf32> to vector<256x1xf32>
    %c0_1 = arith.constant 0 : index
    %c0_2 = arith.constant 0 : index
    %2 = vector.load %arg2[%c0_1, %c0_2] : memref<2x64xf32, #tpu.memory_space<vmem>>, vector<1x64xf32>
    %3 = vector.broadcast %1 : vector<256x1xf32> to vector<256x64xf32>
    %4 = vector.broadcast %2 : vector<1x64xf32> to vector<256x64xf32>
    %5 = arith.mulf %3, %4 : vector<256x64xf32>
    %6 = vector.extract_strided_slice %0 {offsets = [0, 1], sizes = [256, 1], strides = [1, 1]} : vector<256x2xf32> to vector<256x1xf32>
    %c1 = arith.constant 1 : index
    %c0_3 = arith.constant 0 : index
    %7 = vector.load %arg2[%c1, %c0_3] : memref<2x64xf32, #tpu.memory_space<vmem>>, vector<1x64xf32>
    %8 = vector.broadcast %6 : vector<256x1xf32> to vector<256x64xf32>
    %9 = vector.broadcast %7 : vector<1x64xf32> to vector<256x64xf32>
    %10 = arith.mulf %8, %9 : vector<256x64xf32>
    %11 = arith.addf %5, %10 : vector<256x64xf32>
    %c0_4 = arith.constant 0 : index
    %c0_5 = arith.constant 0 : index
    %12 = vector.load %arg3[%c0_4, %c0_5] : memref<1x64xf32, #tpu.memory_space<vmem>>, vector<1x64xf32>
    %13 = vector.broadcast %12 : vector<1x64xf32> to vector<256x64xf32>
    %14 = arith.addf %11, %13 : vector<256x64xf32>
    %15 = math.tanh %14 : vector<256x64xf32>
    %c0_6 = arith.constant 0 : index
    %c0_7 = arith.constant 0 : index
    %c0_8 = arith.constant 0 : index
    %16 = vector.load %arg4[%c0_6, %c0_7, %c0_8] : memref<3x64x64xf32, #tpu.memory_space<vmem>>, vector<1x64x64xf32>
    %17 = vector.shape_cast %16 : vector<1x64x64xf32> to vector<64x64xf32>
    %cst = arith.constant dense<0.000000e+00> : vector<256x64xf32>
    %18 = tpu.matmul %15, %17, %cst {dimension_numbers = #tpu.dot_dimension_numbers<[1], [0], [0], [1], [0, 0, 1, 1], [], []>} : vector<256x64xf32>, vector<64x64xf32>, vector<256x64xf32> -> vector<256x64xf32>
    %c0_9 = arith.constant 0 : index
    %c0_10 = arith.constant 0 : index
    %c0_11 = arith.constant 0 : index
    %19 = vector.load %arg5[%c0_9, %c0_10, %c0_11] : memref<3x1x64xf32, #tpu.memory_space<vmem>>, vector<1x1x64xf32>
    %20 = vector.shape_cast %19 : vector<1x1x64xf32> to vector<1x64xf32>
    %21 = vector.broadcast %20 : vector<1x64xf32> to vector<256x64xf32>
    %22 = arith.addf %18, %21 : vector<256x64xf32>
    %23 = math.tanh %22 : vector<256x64xf32>
    %c1_12 = arith.constant 1 : index
    %c0_13 = arith.constant 0 : index
    %c0_14 = arith.constant 0 : index
    %24 = vector.load %arg4[%c1_12, %c0_13, %c0_14] : memref<3x64x64xf32, #tpu.memory_space<vmem>>, vector<1x64x64xf32>
    %25 = vector.shape_cast %24 : vector<1x64x64xf32> to vector<64x64xf32>
    %cst_15 = arith.constant dense<0.000000e+00> : vector<256x64xf32>
    %26 = tpu.matmul %23, %25, %cst_15 {dimension_numbers = #tpu.dot_dimension_numbers<[1], [0], [0], [1], [0, 0, 1, 1], [], []>} : vector<256x64xf32>, vector<64x64xf32>, vector<256x64xf32> -> vector<256x64xf32>
    %c1_16 = arith.constant 1 : index
    %c0_17 = arith.constant 0 : index
    %c0_18 = arith.constant 0 : index
    %27 = vector.load %arg5[%c1_16, %c0_17, %c0_18] : memref<3x1x64xf32, #tpu.memory_space<vmem>>, vector<1x1x64xf32>
    %28 = vector.shape_cast %27 : vector<1x1x64xf32> to vector<1x64xf32>
    %29 = vector.broadcast %28 : vector<1x64xf32> to vector<256x64xf32>
    %30 = arith.addf %26, %29 : vector<256x64xf32>
    %31 = math.tanh %30 : vector<256x64xf32>
    %c2 = arith.constant 2 : index
    %c0_19 = arith.constant 0 : index
    %c0_20 = arith.constant 0 : index
    %32 = vector.load %arg4[%c2, %c0_19, %c0_20] : memref<3x64x64xf32, #tpu.memory_space<vmem>>, vector<1x64x64xf32>
    %33 = vector.shape_cast %32 : vector<1x64x64xf32> to vector<64x64xf32>
    %cst_21 = arith.constant dense<0.000000e+00> : vector<256x64xf32>
    %34 = tpu.matmul %31, %33, %cst_21 {dimension_numbers = #tpu.dot_dimension_numbers<[1], [0], [0], [1], [0, 0, 1, 1], [], []>} : vector<256x64xf32>, vector<64x64xf32>, vector<256x64xf32> -> vector<256x64xf32>
    %c2_22 = arith.constant 2 : index
    %c0_23 = arith.constant 0 : index
    %c0_24 = arith.constant 0 : index
    %35 = vector.load %arg5[%c2_22, %c0_23, %c0_24] : memref<3x1x64xf32, #tpu.memory_space<vmem>>, vector<1x1x64xf32>
    %36 = vector.shape_cast %35 : vector<1x1x64xf32> to vector<1x64xf32>
    %37 = vector.broadcast %36 : vector<1x64xf32> to vector<256x64xf32>
    %38 = arith.addf %34, %37 : vector<256x64xf32>
    %39 = math.tanh %38 : vector<256x64xf32>
    %c0_25 = arith.constant 0 : index
    %c0_26 = arith.constant 0 : index
    %40 = vector.load %arg6[%c0_25, %c0_26] : memref<1x64xf32, #tpu.memory_space<vmem>>, vector<1x64xf32>
    %41 = vector.broadcast %40 : vector<1x64xf32> to vector<256x64xf32>
    %42 = arith.mulf %39, %41 : vector<256x64xf32>
    %cst_27 = arith.constant dense<0.000000e+00> : vector<256xf32>
    %43 = vector.multi_reduction <add>, %42, %cst_27 [1] : vector<256x64xf32> to vector<256xf32>
    %44 = vector.shape_cast %43 : vector<256xf32> to vector<1x256xf32>
    %c0_28 = arith.constant 0 : index
    %c0_29 = arith.constant 0 : index
    %45 = vector.load %arg7[%c0_28, %c0_29] : memref<1x1xf32, #tpu.memory_space<vmem>>, vector<1x1xf32>
    %46 = vector.broadcast %45 : vector<1x1xf32> to vector<1x256xf32>
    %47 = arith.addf %44, %46 : vector<1x256xf32>
    %c0_30 = arith.constant 0 : index
    %c0_31 = arith.constant 0 : index
    %48 = vector.load %arg8[%c0_30, %c0_31] : memref<1x256xf32, #tpu.memory_space<vmem>>, vector<1x256xf32>
    tpu.vector_store %arg8[%c0_30, %c0_31], %47 {strides = array<i32>} : memref<1x256xf32, #tpu.memory_space<vmem>>, vector<1x256xf32>,
    return
  }
  func.func @transform_0(%arg0: i32) -> (i32, i32) {
    %c0_i32 = arith.constant 0 : i32
    %c0_i32_0 = arith.constant 0 : i32
    return %arg0, %c0_i32 : i32, i32
  }
  func.func @transform_1(%arg0: i32) -> (i32, i32) {
    %c0_i32 = arith.constant 0 : i32
    %c0_i32_0 = arith.constant 0 : i32
    %c0_i32_1 = arith.constant 0 : i32
    return %c0_i32, %c0_i32_0 : i32, i32
  }
  func.func @transform_2(%arg0: i32) -> (i32, i32) {
    %c0_i32 = arith.constant 0 : i32
    %c0_i32_0 = arith.constant 0 : i32
    %c0_i32_1 = arith.constant 0 : i32
    return %c0_i32, %c0_i32_0 : i32, i32
  }
  func.func @transform_3(%arg0: i32) -> (i32, i32, i32) {
    %c0_i32 = arith.constant 0 : i32
    %c0_i32_0 = arith.constant 0 : i32
    %c0_i32_1 = arith.constant 0 : i32
    %c0_i32_2 = arith.constant 0 : i32
    return %c0_i32, %c0_i32_0, %c0_i32_1 : i32, i32, i32
  }
  func.func @transform_4(%arg0: i32) -> (i32, i32, i32) {
    %c0_i32 = arith.constant 0 : i32
    %c0_i32_0 = arith.constant 0 : i32
    %c0_i32_1 = arith.constant 0 : i32
    %c0_i32_2 = arith.constant 0 : i32
    return %c0_i32, %c0_i32_0, %c0_i32_1 : i32, i32, i32
  }
  func.func @transform_5(%arg0: i32) -> (i32, i32) {
    %c0_i32 = arith.constant 0 : i32
    %c0_i32_0 = arith.constant 0 : i32
    %c0_i32_1 = arith.constant 0 : i32
    return %c0_i32, %c0_i32_0 : i32, i32
  }
  func.func @transform_6(%arg0: i32) -> (i32, i32) {
    %c0_i32 = arith.constant 0 : i32
    %c0_i32_0 = arith.constant 0 : i32
    %c0_i32_1 = arith.constant 0 : i32
    return %c0_i32, %c0_i32_0 : i32, i32
  }
  func.func @transform_7(%arg0: i32) -> (i32, i32) {
    %c0_i32 = arith.constant 0 : i32
    %c0_i32_0 = arith.constant 0 : i32
    return %c0_i32, %arg0 : i32, i32
  }
}

</mosaic_0001>

<bundles_post_ra>
// kernel: tpu_custom_call.1
= control target key start
LH: loop header
LB: loop body
LE: loop exit
PB: predicated region body
PF: predicated region fallthrough
CT: control target
= control target key end

     0   :  { %s7450_s0 = inlined_call_operand.vmem [shape: f32[768,2], index: 0, kind: input, shape index: {}]   ;;  %s7451_s1 = inlined_call_operand.vmem [shape: f32[2,64], index: 1, kind: input, shape index: {}]   ;;  %s7452_s2 = inlined_call_operand.vmem [shape: f32[1,64], index: 2, kind: input, shape index: {}]   ;;  %s7453_s3 = inlined_call_operand.vmem [shape: f32[3,64,64], index: 3, kind: input, shape index: {}]   ;;  %s7454_s4 = inlined_call_operand.vmem [shape: f32[3,1,64], index: 4, kind: input, shape index: {}]   ;;  %s7455_s5 = inlined_call_operand.vmem [shape: f32[1,64], index: 5, kind: input, shape index: {}]   ;;  %s7456_s6 = inlined_call_operand.<no memory space> [shape: f32[1,1], index: 6, kind: input, shape index: {}]   ;;  %s7457_s7 = inlined_call_operand.hbm [shape: f32[1,768], index: 7, kind: output, shape index: {}]  }
   0x1   :  { %v12_v0 = vstv %s7456_s6 }
   0x2   :  { %13 = vst [vmem:[#allocation2] sm:$0x1] %v12_v0 }
   0x3   :  { %14 = vsyncpa [#allocation4], 0 }
   0x4   :  { %16 = vsyncpa [#allocation4 + $0x1], 0  ;;  %s5945_s26 = smov 0   ;;  %s5947_s27 = smov 0  }
   0x5   :  { %s5949_s28 = smov 0   ;;  %s5951_s29 = smov 0  }
   0x6 LB: > { %s5069_s6 = sadd.s32 4294967295, %s5896_s29   ;;  %s5070_s30 = sadd.s32 4294967294, %s5896_s29   ;;  %s5896_s29 = sphi %s5951_s29, %s7463_s29   ;;  %s5892_s28 = sphi %s5949_s28, %s7462_s28   ;;  %s5888_s27 = sphi %s5947_s27, %s7461_s27   ;;  %s5884_s26 = sphi %s5945_s26, %s7460_s26  }
   0x7   : > { %s5968_s8 = sadd.s32 1, %s5896_s29   ;;  %s181_s9 = sadd.s32 1, %s5892_s28 }
   0x8   : > { %s178_s10 = ssub.s32 %s5896_s29, %s5968_s8  ;;  %p191_p0 = scmp.ne.s32.totalorder %s5892_s28, %s5888_s27 }
   0x9   : > { %p179_p1 = scmp.eq.s32.totalorder %s178_s10, 0  ;;  %p192_p2 = scmp.eq.s32.totalorder %s5069_s6, 2 }
   0xa   : > { %p197_p3 = scmp.ne.s32.totalorder %s5888_s27, %s5884_s26  ;;  %p198_p4 = scmp.eq.s32.totalorder %s5070_s30, 2 }
   0xb   : > { %s5978_s11 = scalar_select %p179_p1, %s5892_s28, %s181_s9  }
   0xc   : > { %p5980_p5 = por %p192_p2, %p191_p0  ;;  %p5984_p6 = por %p198_p4, %p197_p3 }
   0xd   : > { %p5073_p7 = scmp.ge.s32.totalorder %s5896_s29, 1  ;;  %p243_p8 = scmp.lt.s32.totalorder %s5896_s29, 4 }
   0xf   : > { %p244_p9 = pnand %p5073_p7, %p243_p8 }
  0x10   : > { %s5990_s14 = sshll.u32 (!%p244_p9), %s5069_s6, 5  ;;  %s272_s23 = sand.u32 (!%p244_p9), 1, %s5888_s27  }
  0x11   : > { %247 = sbr.rel (%p244_p9) target bundleno = 1380 (0x564), region = 48  ;;  %p276_p10 = scmp.lt.s32.totalorder (!%p244_p9), %s5990_s14, 95 }
  0x12   : > { %s5074_s24 = sshll.u32 (!%p244_p9), %s272_s23, 1  ;;  %s5009_s9 = scalar_lea.hbm (!%p244_p9), %s7457_s7, %s5990_s14 }
  0x13   : > { %s274_s25 = scalar_lea.vmem (!%p244_p9), [#allocation3], %s5074_s24  ;;  %s4997_s10 = scalar_lea.sflag (!%p244_p9), [#allocation4], %s272_s23 }
  0x16   : > { %v5898_v1 = vmov 0   ;;  %s277_s15 = scalar_select %p276_p10, %s5990_s14, 95  ;;  %v5899_v4 = vmov 1   ;;  %v786_v6 = vld [vmem:[%s7453_s3 + $0x38] sm:$0xff]  ;;  %v785_v8 = vld [vmem:[%s7453_s3 + $0x30] sm:$0xff]  ;;  %v784_v9 = vld [vmem:[%s7453_s3 + $0x28] sm:$0xff] }
  0x17   : > { %5576 = vset.pattern.permute.xlu1 %v5898_v1  ;;  %5574 = vset.pattern.permute.xlu0 %v5898_v1  ;;  %v783_v10 = vld [vmem:[%s7453_s3 + $0x20] sm:$0xff]  ;;  %v782_v12 = vld [vmem:[%s7453_s3 + $0x18] sm:$0xff]  ;;  %v781_v13 = vld [vmem:[%s7453_s3 + $0x10] sm:$0xff]  ;;  %vm794_vm0 = vcmask 523264   ;;  %vm4796_vm1 = vcmask 130112   ;;  %vm4803_vm2 = vcmask 195712  }
  0x18   : > { %s5076_s16 = sshll.u32 %s277_s15, 3  ;;  %5324 = vmatprep.subr.mxu0 %v786_v6  ;;  %5516 = vmatprep.subr.mxu1 %v786_v6  ;;  %v780_v15 = vld [vmem:[%s7453_s3 + $0x8] sm:$0xff]  ;;  %v779_v16 = vld [vmem:[%s7453_s3] sm:$0xff]  ;;  %vm4810_vm3 = vcmask 261312   ;;  %vm4817_vm4 = vcmask 326912   ;;  %vm4824_vm5 = vcmask 392512  }
  0x19   : > { %s5999_s19 = scalar_lea.vmem %s7450_s0, %s5076_s16  ;;  %5325 = vmatpush3.msra.mxu0 %v786_v6  ;;  %5524 = vmatpush3.msra.mxu1 %v786_v6  ;;  %v6061_v45 = vld [vmem:[%s7451_s1] ss:$0 sm:$0xff]  ;;  %v6066_v46 = vld [vmem:[%s7451_s1 + $0x1] ss:$0 sm:$0xff]  ;;  %vm4831_vm6 = vcmask 458112   ;;  %vm4838_vm7 = vcmask 523712  }
  0x1a   : > { %v283_v2 = vld [vmem:[%s5999_s19 + $0x8] sm:$0xff]  ;;  %v282_v3 = vld [vmem:[%s5999_s19] sm:$0xff]  ;;  %v284_v5 = vld [vmem:[%s5999_s19 + $0x10] sm:$0xff]  ;;  %5326 = vmatprep.subr.mxu0 %v785_v8  ;;  %5517 = vmatprep.subr.mxu1 %v785_v8  ;;  %vm4845_vm8 = vcmask 589312   ;;  %vm4852_vm9 = vcmask 654912   ;;  %vm4859_vm10 = vcmask 720512  }
  0x1b   : > { %322 = vperm.xlu1 %5576, %v283_v2   ;;  %317 = vperm.xlu0 %5574, %v282_v3   ;;  %v285_v7 = vld [vmem:[%s5999_s19 + $0x18] sm:$0xff]  ;;  %v286_v11 = vld [vmem:[%s5999_s19 + $0x20] sm:$0xff]  ;;  %v287_v14 = vld [vmem:[%s5999_s19 + $0x28] sm:$0xff]  ;;  %vm4866_vm11 = vcmask 786112   ;;  %vm4873_vm12 = vcmask 851712   ;;  %vm4880_vm13 = vcmask 917312  }
  0x1c   : > { %5327 = vmatpush3.msra.mxu0 %v785_v8  ;;  %5525 = vmatpush3.msra.mxu1 %v785_v8  ;;  %v288_v17 = vld [vmem:[%s5999_s19 + $0x30] sm:$0xff]  ;;  %v289_v18 = vld [vmem:[%s5999_s19 + $0x38] sm:$0xff]  ;;  %v290_v19 = vld [vmem:[%s5999_s19 + $0x40] sm:$0xff]  ;;  %vm4887_vm14 = vcmask 982912   ;;  %vm4894_vm15 = vcmask 1048512   ;;  %s5901_s16 = smov [#allocation3]  }
  0x1d   : > { %5328 = vmatprep.subr.mxu0 %v784_v9  ;;  %5518 = vmatprep.subr.mxu1 %v784_v9  ;;  %v291_v20 = vld [vmem:[%s5999_s19 + $0x48] sm:$0xff]  ;;  %v292_v21 = vld [vmem:[%s5999_s19 + $0x50] sm:$0xff]  ;;  %v293_v22 = vld [vmem:[%s5999_s19 + $0x58] sm:$0xff]  ;;  %s5840_s17 = sshll.u32 %s5901_s16, 4  ;;  %s5841_s17 = int_to_ptr.vmem [resolvable:$false] %s5840_s17 }
  0x1e   : > { %5329 = vmatpush3.msra.mxu0 %v784_v9  ;;  %5526 = vmatpush3.msra.mxu1 %v784_v9  ;;  %v294_v23 = vld [vmem:[%s5999_s19 + $0x60] sm:$0xff]  ;;  %v295_v24 = vld [vmem:[%s5999_s19 + $0x68] sm:$0xff]  ;;  %v296_v25 = vld [vmem:[%s5999_s19 + $0x70] sm:$0xff]  ;;  %s5842_s18 = scalar_lea.vmem %s5841_s17, 64 }
  0x1f   : > { %5577 = vset.pattern.permute.xlu1 %v5899_v4  ;;  %5575 = vset.pattern.permute.xlu0 %v5899_v4  ;;  %v297_v26 = vld [vmem:[%s5999_s19 + $0x78] sm:$0xff]  ;;  %v298_v27 = vld [vmem:[%s5999_s19 + $0x80] sm:$0xff]  ;;  %v299_v28 = vld [vmem:[%s5999_s19 + $0x88] sm:$0xff] }
  0x20   : > { %517 = vperm.xlu1 %5577, %v283_v2   ;;  %513 = vperm.xlu0 %5575, %v282_v3   ;;  %v300_v29 = vld [vmem:[%s5999_s19 + $0x90] sm:$0xff]  ;;  %v301_v30 = vld [vmem:[%s5999_s19 + $0x98] sm:$0xff]  ;;  %v302_v31 = vld [vmem:[%s5999_s19 + $0xa0] sm:$0xff] }
  0x21   : > { %5330 = vmatprep.subr.mxu0 %v783_v10  ;;  %5519 = vmatprep.subr.mxu1 %v783_v10  ;;  %v303_v32 = vld [vmem:[%s5999_s19 + $0xa8] sm:$0xff]  ;;  %v304_v33 = vld [vmem:[%s5999_s19 + $0xb0] sm:$0xff]  ;;  %v305_v34 = vld [vmem:[%s5999_s19 + $0xb8] sm:$0xff] }
  0x22   : > { %5331 = vmatpush3.msra.mxu0 %v783_v10  ;;  %5527 = vmatpush3.msra.mxu1 %v783_v10  ;;  %v306_v35 = vld [vmem:[%s5999_s19 + $0xc0] sm:$0xff]  ;;  %v307_v36 = vld [vmem:[%s5999_s19 + $0xc8] sm:$0xff]  ;;  %v308_v37 = vld [vmem:[%s5999_s19 + $0xd0] sm:$0xff] }
  0x23   : > { %5332 = vmatprep.subr.mxu0 %v782_v12  ;;  %5520 = vmatprep.subr.mxu1 %v782_v12  ;;  %v309_v38 = vld [vmem:[%s5999_s19 + $0xd8] sm:$0xff]  ;;  %v310_v39 = vld [vmem:[%s5999_s19 + $0xe0] sm:$0xff]  ;;  %v311_v40 = vld [vmem:[%s5999_s19 + $0xe8] sm:$0xff] }
  0x24   : > { %5578 = vset.pattern.permute.xlu1 %v5898_v1  ;;  %521 = vperm.xlu0 %5575, %v284_v5   ;;  %v312_v41 = vld [vmem:[%s5999_s19 + $0xf0] sm:$0xff]  ;;  %v313_v42 = vld [vmem:[%s5999_s19 + $0xf8] sm:$0xff]  ;;  %v6076_v53 = vld [vmem:[%s7452_s2] ss:$0 sm:$0xff]  ;;  %s5011_s19 = sshll.u32 %s274_s25, 4  ;;  %s5012_s19 = int_to_ptr.vmem [resolvable:$true] %s5011_s19 }
  0x25   : > { %327 = vperm.xlu1 %5578, %v284_v5   ;;  %5333 = vmatpush3.msra.mxu0 %v782_v12  ;;  %s5836_s15 = scalar_lea.vmem %s5012_s19, 32  ;;  %p5843_p0 = scmp.lt.s32.totalorder %s5012_s19, %s5841_s17 }
  0x26   : > { %5334 = vmatprep.subr.mxu0 %v781_v13  ;;  %5528 = vmatpush3.msra.mxu1 %v782_v12  ;;  %p5837_p11 = scmp.ne.s32.totalorder %s5012_s19, %s5836_s15  ;;  %p5844_p1 = scmp.lt.s32.totalorder %s5842_s18, %s5836_s15 }
  0x27   : > { %5335 = vmatpush3.msra.mxu0 %v781_v13  ;;  %5521 = vmatprep.subr.mxu1 %v781_v13 }
  0x28   : > { %525 = vperm.xlu0 %5575, %v285_v7   ;;  %5336 = vmatprep.subr.mxu0 %v780_v15  ;;  %p5838_p12 = pnand %p5837_p11, %p5980_p5  ;;  %p5845_p2 = por %p5844_p1, %p5843_p0 }
  0x29   : > { %332 = vperm.xlu1 %5578, %v285_v7   ;;  %5337 = vmatpush3.msra.mxu0 %v780_v15 }
  0x2a   : > { %5338 = vmatprep.subr.mxu0 %v779_v16  ;;  %5529 = vmatpush3.msra.mxu1 %v781_v13  ;;  %p5839_p13 = pneg %p5838_p12 }
  0x2b   : > { %5339 = vmatpush3.msra.mxu0 %v779_v16  ;;  %5522 = vmatprep.subr.mxu1 %v780_v15 }
  0x2c   : > { %529 = vperm.xlu0 %5575, %v286_v11   ;;  %5530 = vmatpush3.msra.mxu1 %v780_v15  ;;  %p5846_p3 = pnand %p5845_p2, %p5839_p13 }
  0x2d   : > { %337 = vperm.xlu1 %5578, %v286_v11   ;;  %5523 = vmatprep.subr.mxu1 %v779_v16 }
  0x2e   : > { %5531 = vmatpush3.msra.mxu1 %v779_v16 }
  0x30   : > { %533 = vperm.xlu0 %5575, %v287_v14  }
  0x31   : > { %342 = vperm.xlu1 %5578, %v287_v14  }
  0x34   : > { %537 = vperm.xlu0 %5575, %v288_v17  }
  0x35   : > { %347 = vperm.xlu1 %5578, %v288_v17  }
  0x38   : > { %541 = vperm.xlu0 %5575, %v289_v18  }
  0x39   : > { %352 = vperm.xlu1 %5578, %v289_v18  }
  0x3c   : > { %545 = vperm.xlu0 %5575, %v290_v19  }
  0x3d   : > { %357 = vperm.xlu1 %5578, %v290_v19  }
  0x40   : > { %549 = vperm.xlu0 %5575, %v291_v20  }
  0x41   : > { %362 = vperm.xlu1 %5578, %v291_v20  }
  0x44   : > { %553 = vperm.xlu0 %5575, %v292_v21  }
  0x45   : > { %367 = vperm.xlu1 %5578, %v292_v21  }
  0x48   : > { %557 = vperm.xlu0 %5575, %v293_v22  }
  0x49   : > { %372 = vperm.xlu1 %5578, %v293_v22  }
  0x4c   : > { %561 = vperm.xlu0 %5575, %v294_v23  }
  0x4d   : > { %377 = vperm.xlu1 %5578, %v294_v23  }
  0x50   : > { %565 = vperm.xlu0 %5575, %v295_v24  }
  0x51   : > { %382 = vperm.xlu1 %5578, %v295_v24  }
  0x54   : > { %569 = vperm.xlu0 %5575, %v296_v25  }
  0x55   : > { %387 = vperm.xlu1 %5578, %v296_v25  }
  0x58   : > { %573 = vperm.xlu0 %5575, %v297_v26  }
  0x59   : > { %392 = vperm.xlu1 %5578, %v297_v26  }
  0x5c   : > { %577 = vperm.xlu0 %5575, %v298_v27  }
  0x5d   : > { %397 = vperm.xlu1 %5578, %v298_v27  }
  0x60   : > { %581 = vperm.xlu0 %5575, %v299_v28  }
  0x61   : > { %402 = vperm.xlu1 %5578, %v299_v28  }
  0x64   : > { %585 = vperm.xlu0 %5575, %v300_v29  }
  0x65   : > { %407 = vperm.xlu1 %5578, %v300_v29  }
  0x68   : > { %589 = vperm.xlu0 %5575, %v301_v30  }
  0x69   : > { %412 = vperm.xlu1 %5578, %v301_v30  }
  0x6c   : > { %593 = vperm.xlu0 %5575, %v302_v31  }
  0x6d   : > { %417 = vperm.xlu1 %5578, %v302_v31  }
  0x70   : > { %597 = vperm.xlu0 %5575, %v303_v32  }
  0x71   : > { %422 = vperm.xlu1 %5578, %v303_v32  }
  0x74   : > { %601 = vperm.xlu0 %5575, %v304_v33  }
  0x75   : > { %427 = vperm.xlu1 %5578, %v304_v33  }
  0x78   : > { %605 = vperm.xlu0 %5575, %v305_v34  }
  0x79   : > { %432 = vperm.xlu1 %5578, %v305_v34  }
  0x7c   : > { %609 = vperm.xlu0 %5575, %v306_v35  }
  0x7d   : > { %437 = vperm.xlu1 %5578, %v306_v35  }
  0x80   : > { %613 = vperm.xlu0 %5575, %v307_v36  }
  0x81   : > { %442 = vperm.xlu1 %5578, %v307_v36  }
  0x84   : > { %617 = vperm.xlu0 %5575, %v308_v37  }
  0x85   : > { %447 = vperm.xlu1 %5578, %v308_v37  }
  0x88   : > { %621 = vperm.xlu0 %5575, %v309_v38  }
  0x89   : > { %452 = vperm.xlu1 %5578, %v309_v38  }
  0x8c   : > { %625 = vperm.xlu0 %5575, %v310_v39  }
  0x8d   : > { %457 = vperm.xlu1 %5578, %v310_v39  }
  0x90   : > { %629 = vperm.xlu0 %5575, %v311_v40  }
  0x91   : > { %462 = vperm.xlu1 %5578, %v311_v40  }
  0x94   : > { %633 = vperm.xlu0 %5575, %v312_v41  }
  0x95   : > { %467 = vperm.xlu1 %5578, %v312_v41  }
  0x96   : > { %v323_v43 = vpop.permute.xlu1 %322  ;;  %v318_v44 = vpop.permute.xlu0 %317 }
  0x97   : > { %v480_v49 = vmul.f32 %v6061_v45, %v323_v43  ;;  %v479_v50 = vmul.f32 %v6061_v45, %v318_v44 }
  0x98   : > { %637 = vperm.xlu0 %5575, %v313_v42  }
  0x99   : > { %472 = vperm.xlu1 %5578, %v313_v42  }
  0x9b   : > { %v518_v47 = vpop.permute.xlu1 %517  ;;  %v514_v48 = vpop.permute.xlu0 %513 }
  0x9c   : > { %v645_v51 = vmul.f32 %v6066_v46, %v518_v47  ;;  %v644_v52 = vmul.f32 %v6066_v46, %v514_v48  ;;  %5579 = vset.pattern.permute.xlu0 %v5898_v1 }
  0x9e   : > { %v677_v54 = vadd.f32 %v645_v51, %v480_v49  ;;  %v676_v55 = vadd.f32 %v644_v52, %v479_v50 }
  0x9f   : > { %v522_v56 = vpop.permute.xlu0 %521 }
  0xa0   : > { %v716_v57 = vadd.f32 %v6076_v53, %v677_v54  ;;  %v715_v58 = vadd.f32 %v6076_v53, %v676_v55  ;;  %v646_v59 = vmul.f32 %v6066_v46, %v522_v56  ;;  %v328_v60 = vpop.permute.xlu1 %327 }
  0xa1   : > { %v481_v61 = vmul.f32 %v6061_v45, %v328_v60 }
  0xa2   : > { %5580 = vtanh.f32 %v716_v57 }
  0xa3   : > { %5582 = vtanh.f32 %v715_v58  ;;  %v678_v62 = vadd.f32 %v646_v59, %v481_v61  ;;  %v526_v63 = vpop.permute.xlu0 %525 }
  0xa4   : > { %v647_v0 = vmul.f32 %v6066_v46, %v526_v63  ;;  %v333_v1 = vpop.permute.xlu1 %332 }
  0xa5   : > { %v717_v2 = vadd.f32 %v6076_v53, %v678_v62  ;;  %v482_v3 = vmul.f32 %v6061_v45, %v333_v1 }
  0xa7   : > { %5584 = vtanh.f32 %v717_v2  ;;  %v679_v4 = vadd.f32 %v647_v0, %v482_v3  ;;  %v530_v5 = vpop.permute.xlu0 %529 }
  0xa8   : > { %v648_v6 = vmul.f32 %v6066_v46, %v530_v5  ;;  %v338_v7 = vpop.permute.xlu1 %337 }
  0xa9   : > { %v718_v8 = vadd.f32 %v6076_v53, %v679_v4  ;;  %v483_v9 = vmul.f32 %v6061_v45, %v338_v7 }
  0xab   : > { %5586 = vtanh.f32 %v718_v8  ;;  %v680_v10 = vadd.f32 %v648_v6, %v483_v9  ;;  %v534_v11 = vpop.permute.xlu0 %533 }
  0xac   : > { %v649_v12 = vmul.f32 %v6066_v46, %v534_v11  ;;  %v343_v13 = vpop.permute.xlu1 %342 }
  0xad   : > { %v719_v14 = vadd.f32 %v6076_v53, %v680_v10  ;;  %v484_v15 = vmul.f32 %v6061_v45, %v343_v13 }
  0xaf   : > { %v5581_v16 = vpop.eup %5580  ;;  %5588 = vtanh.f32 %v719_v14  ;;  %v681_v17 = vadd.f32 %v649_v12, %v484_v15  ;;  %v538_v18 = vpop.permute.xlu0 %537 }
  0xb0   : > { %v5583_v19 = vpop.eup %5582  ;;  %v650_v20 = vmul.f32 %v6066_v46, %v538_v18  ;;  %v348_v21 = vpop.permute.xlu1 %347 }
  0xb1   : > { %v720_v22 = vadd.f32 %v6076_v53, %v681_v17  ;;  %v485_v23 = vmul.f32 %v6061_v45, %v348_v21  ;;  %5340 = vmatprep.mubr.msk.f32.mxu0 %vm794_vm0, %v5583_v19 }
  0xb2   : > { %5341 = vmatmul.mubr.msk.f32.vlgmr.msra.gmra.mxu0 %vm794_vm0, %v5581_v16 }
  0xb3   : > { %5590 = vtanh.f32 %v720_v22  ;;  %v682_v24 = vadd.f32 %v650_v20, %v485_v23  ;;  %v542_v25 = vpop.permute.xlu0 %541 }
  0xb4   : > { %v5585_v26 = vpop.eup %5584  ;;  %v651_v27 = vmul.f32 %v6066_v46, %v542_v25  ;;  %v353_v28 = vpop.permute.xlu1 %352 }
  0xb5   : > { %v721_v29 = vadd.f32 %v6076_v53, %v682_v24  ;;  %v486_v30 = vmul.f32 %v6061_v45, %v353_v28  ;;  %5343 = vmatprep.mubr.msk.f32.mxu0 %vm794_vm0, %v5585_v26 }
  0xb7   : > { %5592 = vtanh.f32 %v721_v29  ;;  %v683_v31 = vadd.f32 %v651_v27, %v486_v30  ;;  %v546_v32 = vpop.permute.xlu0 %545 }
  0xb8   : > { %v5587_v33 = vpop.eup %5586  ;;  %v652_v34 = vmul.f32 %v6066_v46, %v546_v32  ;;  %v358_v35 = vpop.permute.xlu1 %357 }
  0xb9   : > { %v722_v36 = vadd.f32 %v6076_v53, %v683_v31  ;;  %v487_v37 = vmul.f32 %v6061_v45, %v358_v35  ;;  %5344 = vmatmul.mubr.msk.f32.gmra.mxu0 %vm794_vm0, %v5587_v33 }
  0xbb   : > { %5594 = vtanh.f32 %v722_v36  ;;  %v684_v38 = vadd.f32 %v652_v34, %v487_v37  ;;  %v550_v39 = vpop.permute.xlu0 %549 }
  0xbc   : > { %v5589_v40 = vpop.eup %5588  ;;  %v653_v41 = vmul.f32 %v6066_v46, %v550_v39  ;;  %v363_v42 = vpop.permute.xlu1 %362 }
  0xbd   : > { %v723_v43 = vadd.f32 %v6076_v53, %v684_v38  ;;  %v488_v44 = vmul.f32 %v6061_v45, %v363_v42  ;;  %5346 = vmatprep.mubr.msk.f32.mxu0 %vm794_vm0, %v5589_v40 }
  0xbf   : > { %5596 = vtanh.f32 %v723_v43  ;;  %v685_v47 = vadd.f32 %v653_v41, %v488_v44  ;;  %v554_v48 = vpop.permute.xlu0 %553 }
  0xc0   : > { %v5591_v49 = vpop.eup %5590  ;;  %v654_v50 = vmul.f32 %v6066_v46, %v554_v48  ;;  %v368_v51 = vpop.permute.xlu1 %367 }
  0xc1   : > { %v724_v52 = vadd.f32 %v6076_v53, %v685_v47  ;;  %v489_v54 = vmul.f32 %v6061_v45, %v368_v51  ;;  %5347 = vmatmul.mubr.msk.f32.gmra.mxu0 %vm794_vm0, %v5591_v49 }
  0xc3   : > { %5598 = vtanh.f32 %v724_v52  ;;  %v686_v55 = vadd.f32 %v654_v50, %v489_v54  ;;  %v558_v56 = vpop.permute.xlu0 %557 }
  0xc4   : > { %v5593_v57 = vpop.eup %5592  ;;  %v655_v58 = vmul.f32 %v6066_v46, %v558_v56  ;;  %v373_v59 = vpop.permute.xlu1 %372 }
  0xc5   : > { %v725_v60 = vadd.f32 %v6076_v53, %v686_v55  ;;  %v490_v61 = vmul.f32 %v6061_v45, %v373_v59  ;;  %5349 = vmatprep.mubr.msk.f32.mxu0 %vm794_vm0, %v5593_v57 }
  0xc7   : > { %5600 = vtanh.f32 %v725_v60  ;;  %v687_v62 = vadd.f32 %v655_v58, %v490_v61  ;;  %v562_v63 = vpop.permute.xlu0 %561 }
  0xc8   : > { %v5595_v0 = vpop.eup %5594  ;;  %v656_v1 = vmul.f32 %v6066_v46, %v562_v63  ;;  %v378_v2 = vpop.permute.xlu1 %377 }
  0xc9   : > { %v726_v3 = vadd.f32 %v6076_v53, %v687_v62  ;;  %v491_v4 = vmul.f32 %v6061_v45, %v378_v2  ;;  %5350 = vmatmul.mubr.msk.f32.gmra.mxu0 %vm794_vm0, %v5595_v0 }
  0xcb   : > { %5602 = vtanh.f32 %v726_v3  ;;  %v688_v5 = vadd.f32 %v656_v1, %v491_v4  ;;  %v566_v6 = vpop.permute.xlu0 %565 }
  0xcc   : > { %v5597_v7 = vpop.eup %5596  ;;  %v657_v8 = vmul.f32 %v6066_v46, %v566_v6  ;;  %v383_v9 = vpop.permute.xlu1 %382 }
  0xcd   : > { %v727_v10 = vadd.f32 %v6076_v53, %v688_v5  ;;  %v492_v11 = vmul.f32 %v6061_v45, %v383_v9  ;;  %5352 = vmatprep.mubr.msk.f32.mxu0 %vm794_vm0, %v5597_v7 }
  0xcf   : > { %5604 = vtanh.f32 %v727_v10  ;;  %v689_v12 = vadd.f32 %v657_v8, %v492_v11  ;;  %v570_v13 = vpop.permute.xlu0 %569 }
  0xd0   : > { %v5599_v14 = vpop.eup %5598  ;;  %v658_v15 = vmul.f32 %v6066_v46, %v570_v13  ;;  %v388_v16 = vpop.permute.xlu1 %387 }
  0xd1   : > { %v728_v17 = vadd.f32 %v6076_v53, %v689_v12  ;;  %v493_v18 = vmul.f32 %v6061_v45, %v388_v16  ;;  %5353 = vmatmul.mubr.msk.f32.gmra.mxu0 %vm794_vm0, %v5599_v14 }
  0xd3   : > { %5606 = vtanh.f32 %v728_v17  ;;  %v690_v19 = vadd.f32 %v658_v15, %v493_v18  ;;  %v574_v20 = vpop.permute.xlu0 %573 }
  0xd4   : > { %v5601_v21 = vpop.eup %5600  ;;  %v659_v22 = vmul.f32 %v6066_v46, %v574_v20  ;;  %v393_v23 = vpop.permute.xlu1 %392 }
  0xd5   : > { %v729_v24 = vadd.f32 %v6076_v53, %v690_v19  ;;  %v494_v25 = vmul.f32 %v6061_v45, %v393_v23  ;;  %5355 = vmatprep.mubr.msk.f32.mxu0 %vm794_vm0, %v5601_v21  ;;  %v5120_v21 = vld [vmem:[%s7453_s3 + $0x78] sm:$0xff] }
  0xd6   : > { %5388 = vmatprep.subr.mxu1 %v5120_v21 }
  0xd7   : > { %5608 = vtanh.f32 %v729_v24  ;;  %v691_v26 = vadd.f32 %v659_v22, %v494_v25  ;;  %v578_v27 = vpop.permute.xlu0 %577  ;;  %v5119_v24 = vld [vmem:[%s7453_s3 + $0x70] sm:$0xff] }
  0xd8   : > { %v5603_v28 = vpop.eup %5602  ;;  %v660_v29 = vmul.f32 %v6066_v46, %v578_v27  ;;  %v398_v30 = vpop.permute.xlu1 %397 }
  0xd9   : > { %v730_v31 = vadd.f32 %v6076_v53, %v691_v26  ;;  %v495_v32 = vmul.f32 %v6061_v45, %v398_v30  ;;  %5356 = vmatmul.mubr.msk.f32.gmra.mxu0 %vm794_vm0, %v5603_v28  ;;  %v5118_v30 = vld [vmem:[%s7453_s3 + $0x68] sm:$0xff] }
  0xdb   : > { %5610 = vtanh.f32 %v730_v31  ;;  %v692_v33 = vadd.f32 %v660_v29, %v495_v32  ;;  %v582_v34 = vpop.permute.xlu0 %581 }
  0xdc   : > { %v5605_v35 = vpop.eup %5604  ;;  %v661_v36 = vmul.f32 %v6066_v46, %v582_v34  ;;  %v403_v37 = vpop.permute.xlu1 %402 }
  0xdd   : > { %v731_v38 = vadd.f32 %v6076_v53, %v692_v33  ;;  %v496_v39 = vmul.f32 %v6061_v45, %v403_v37  ;;  %5358 = vmatprep.mubr.msk.f32.mxu0 %vm794_vm0, %v5605_v35  ;;  %v5117_v33 = vld [vmem:[%s7453_s3 + $0x60] sm:$0xff] }
  0xdf   : > { %5612 = vtanh.f32 %v731_v38  ;;  %v693_v40 = vadd.f32 %v661_v36, %v496_v39  ;;  %v586_v41 = vpop.permute.xlu0 %585  ;;  %v5116_v39 = vld [vmem:[%s7453_s3 + $0x58] sm:$0xff] }
  0xe0   : > { %v5607_v42 = vpop.eup %5606  ;;  %v662_v43 = vmul.f32 %v6066_v46, %v586_v41  ;;  %v408_v44 = vpop.permute.xlu1 %407 }
  0xe1   : > { %v732_v47 = vadd.f32 %v6076_v53, %v693_v40  ;;  %v497_v48 = vmul.f32 %v6061_v45, %v408_v44  ;;  %5359 = vmatmul.mubr.msk.f32.gmra.mxu0 %vm794_vm0, %v5607_v42  ;;  %v5115_v40 = vld [vmem:[%s7453_s3 + $0x50] sm:$0xff] }
  0xe3   : > { %5614 = vtanh.f32 %v732_v47  ;;  %v694_v49 = vadd.f32 %v662_v43, %v497_v48  ;;  %v590_v50 = vpop.permute.xlu0 %589 }
  0xe4   : > { %v5609_v51 = vpop.eup %5608  ;;  %v663_v52 = vmul.f32 %v6066_v46, %v590_v50  ;;  %v413_v54 = vpop.permute.xlu1 %412  ;;  %v5114_v50 = vld [vmem:[%s7453_s3 + $0x48] sm:$0xff] }
  0xe5   : > { %v733_v55 = vadd.f32 %v6076_v53, %v694_v49  ;;  %v498_v56 = vmul.f32 %v6061_v45, %v413_v54  ;;  %5361 = vmatprep.mubr.msk.f32.mxu0 %vm794_vm0, %v5609_v51  ;;  %v5113_v54 = vld [vmem:[%s7453_s3 + $0x40] sm:$0xff] }
  0xe7   : > { %5616 = vtanh.f32 %v733_v55  ;;  %v695_v57 = vadd.f32 %v663_v52, %v498_v56  ;;  %v594_v58 = vpop.permute.xlu0 %593 }
  0xe8   : > { %v5611_v59 = vpop.eup %5610  ;;  %v664_v60 = vmul.f32 %v6066_v46, %v594_v58  ;;  %v418_v61 = vpop.permute.xlu1 %417 }
  0xe9   : > { %v734_v62 = vadd.f32 %v6076_v53, %v695_v57  ;;  %v499_v63 = vmul.f32 %v6061_v45, %v418_v61  ;;  %5362 = vmatmul.mubr.msk.f32.gmra.mxu0 %vm794_vm0, %v5611_v59 }
  0xeb   : > { %5618 = vtanh.f32 %v734_v62  ;;  %v696_v0 = vadd.f32 %v664_v60, %v499_v63  ;;  %v598_v1 = vpop.permute.xlu0 %597 }
  0xec   : > { %v5613_v2 = vpop.eup %5612  ;;  %v665_v3 = vmul.f32 %v6066_v46, %v598_v1  ;;  %v423_v4 = vpop.permute.xlu1 %422 }
  0xed   : > { %v735_v5 = vadd.f32 %v6076_v53, %v696_v0  ;;  %v500_v6 = vmul.f32 %v6061_v45, %v423_v4  ;;  %5364 = vmatprep.mubr.msk.f32.mxu1 %vm794_vm0, %v5613_v2 }
  0xef   : > { %5620 = vtanh.f32 %v735_v5  ;;  %v697_v7 = vadd.f32 %v665_v3, %v500_v6  ;;  %v602_v8 = vpop.permute.xlu0 %601 }
  0xf0   : > { %v5615_v9 = vpop.eup %5614  ;;  %v666_v10 = vmul.f32 %v6066_v46, %v602_v8  ;;  %v428_v11 = vpop.permute.xlu1 %427 }
  0xf1   : > { %v736_v12 = vadd.f32 %v6076_v53, %v697_v7  ;;  %v501_v13 = vmul.f32 %v6061_v45, %v428_v11  ;;  %5365 = vmatmul.mubr.msk.f32.vlgmr.msra.gmra.mxu1 %vm794_vm0, %v5615_v9 }
  0xf2   : > { %5389 = vmatpush3.msra.mxu1 %v5120_v21 }
  0xf3   : > { %5622 = vtanh.f32 %v736_v12  ;;  %v698_v14 = vadd.f32 %v666_v10, %v501_v13  ;;  %v606_v15 = vpop.permute.xlu0 %605  ;;  %5390 = vmatprep.subr.mxu1 %v5119_v24 }
  0xf4   : > { %v5617_v16 = vpop.eup %5616  ;;  %v667_v17 = vmul.f32 %v6066_v46, %v606_v15  ;;  %v433_v18 = vpop.permute.xlu1 %432  ;;  %5391 = vmatpush3.msra.mxu1 %v5119_v24 }
  0xf5   : > { %v737_v19 = vadd.f32 %v6076_v53, %v698_v14  ;;  %v502_v20 = vmul.f32 %v6061_v45, %v433_v18  ;;  %5367 = vmatprep.mubr.msk.f32.mxu1 %vm794_vm0, %v5617_v16  ;;  %5392 = vmatprep.subr.mxu1 %v5118_v30 }
  0xf6   : > { %5393 = vmatpush3.msra.mxu1 %v5118_v30 }
  0xf7   : > { %5624 = vtanh.f32 %v737_v19  ;;  %v699_v22 = vadd.f32 %v667_v17, %v502_v20  ;;  %v610_v23 = vpop.permute.xlu0 %609  ;;  %5394 = vmatprep.subr.mxu1 %v5117_v33 }
  0xf8   : > { %v5619_v25 = vpop.eup %5618  ;;  %v668_v26 = vmul.f32 %v6066_v46, %v610_v23  ;;  %v438_v27 = vpop.permute.xlu1 %437  ;;  %5395 = vmatpush3.msra.mxu1 %v5117_v33 }
  0xf9   : > { %v738_v28 = vadd.f32 %v6076_v53, %v699_v22  ;;  %v503_v29 = vmul.f32 %v6061_v45, %v438_v27  ;;  %5368 = vmatmul.mubr.msk.f32.gmra.mxu1 %vm794_vm0, %v5619_v25  ;;  %5396 = vmatprep.subr.mxu1 %v5116_v39 }
  0xfa   : > { %5397 = vmatpush3.msra.mxu1 %v5116_v39 }
  0xfb   : > { %5626 = vtanh.f32 %v738_v28  ;;  %v700_v31 = vadd.f32 %v668_v26, %v503_v29  ;;  %v614_v32 = vpop.permute.xlu0 %613  ;;  %5398 = vmatprep.subr.mxu1 %v5115_v40  ;;  %v6229_v29 = vld [vmem:[%s7454_s4] ss:$0 sm:$0xff] }
  0xfc   : > { %v5621_v34 = vpop.eup %5620  ;;  %v669_v35 = vmul.f32 %v6066_v46, %v614_v32  ;;  %v443_v36 = vpop.permute.xlu1 %442  ;;  %5399 = vmatpush3.msra.mxu1 %v5115_v40 }
  0xfd   : > { %v739_v37 = vadd.f32 %v6076_v53, %v700_v31  ;;  %v504_v38 = vmul.f32 %v6061_v45, %v443_v36  ;;  %5370 = vmatprep.mubr.msk.f32.mxu1 %vm794_vm0, %v5621_v34  ;;  %5400 = vmatprep.subr.mxu1 %v5114_v50 }
  0xfe   : > { %5401 = vmatpush3.msra.mxu1 %v5114_v50 }
  0xff   : > { %5628 = vtanh.f32 %v739_v37  ;;  %v701_v41 = vadd.f32 %v669_v35, %v504_v38  ;;  %v618_v42 = vpop.permute.xlu0 %617  ;;  %5402 = vmatprep.subr.mxu1 %v5113_v54 }
 0x100   : > { %v5623_v43 = vpop.eup %5622  ;;  %v670_v44 = vmul.f32 %v6066_v46, %v618_v42  ;;  %v448_v47 = vpop.permute.xlu1 %447  ;;  %5403 = vmatpush3.msra.mxu1 %v5113_v54 }
 0x101   : > { %v740_v48 = vadd.f32 %v6076_v53, %v701_v41  ;;  %v505_v49 = vmul.f32 %v6061_v45, %v448_v47  ;;  %5371 = vmatmul.mubr.msk.f32.gmra.mxu1 %vm794_vm0, %v5623_v43 }
 0x103   : > { %5630 = vtanh.f32 %v740_v48  ;;  %v702_v51 = vadd.f32 %v670_v44, %v505_v49  ;;  %v622_v52 = vpop.permute.xlu0 %621 }
 0x104   : > { %v5625_v55 = vpop.eup %5624  ;;  %v671_v56 = vmul.f32 %v6066_v46, %v622_v52  ;;  %v453_v57 = vpop.permute.xlu1 %452 }
 0x105   : > { %v741_v58 = vadd.f32 %v6076_v53, %v702_v51  ;;  %v506_v59 = vmul.f32 %v6061_v45, %v453_v57  ;;  %5373 = vmatprep.mubr.msk.f32.mxu1 %vm794_vm0, %v5625_v55 }
 0x107   : > { %5632 = vtanh.f32 %v741_v58  ;;  %v703_v60 = vadd.f32 %v671_v56, %v506_v59  ;;  %v626_v61 = vpop.permute.xlu0 %625 }
 0x108   : > { %v5627_v62 = vpop.eup %5626  ;;  %v672_v63 = vmul.f32 %v6066_v46, %v626_v61  ;;  %v458_v0 = vpop.permute.xlu1 %457 }
 0x109   : > { %v742_v1 = vadd.f32 %v6076_v53, %v703_v60  ;;  %v507_v2 = vmul.f32 %v6061_v45, %v458_v0  ;;  %5374 = vmatmul.mubr.msk.f32.gmra.mxu1 %vm794_vm0, %v5627_v62 }
 0x10b   : > { %5634 = vtanh.f32 %v742_v1  ;;  %v704_v3 = vadd.f32 %v672_v63, %v507_v2  ;;  %v630_v4 = vpop.permute.xlu0 %629 }
 0x10c   : > { %v5629_v5 = vpop.eup %5628  ;;  %v673_v6 = vmul.f32 %v6066_v46, %v630_v4  ;;  %v463_v7 = vpop.permute.xlu1 %462 }
 0x10d   : > { %v743_v8 = vadd.f32 %v6076_v53, %v704_v3  ;;  %v508_v9 = vmul.f32 %v6061_v45, %v463_v7  ;;  %5376 = vmatprep.mubr.msk.f32.mxu1 %vm794_vm0, %v5629_v5 }
 0x10f   : > { %5636 = vtanh.f32 %v743_v8  ;;  %v705_v10 = vadd.f32 %v673_v6, %v508_v9  ;;  %v634_v11 = vpop.permute.xlu0 %633 }
 0x110   : > { %v5631_v12 = vpop.eup %5630  ;;  %v674_v13 = vmul.f32 %v6066_v46, %v634_v11  ;;  %v468_v14 = vpop.permute.xlu1 %467 }
 0x111   : > { %v744_v15 = vadd.f32 %v6076_v53, %v705_v10  ;;  %v509_v16 = vmul.f32 %v6061_v45, %v468_v14  ;;  %5377 = vmatmul.mubr.msk.f32.gmra.mxu1 %vm794_vm0, %v5631_v12 }
 0x113   : > { %5638 = vtanh.f32 %v744_v15  ;;  %v706_v17 = vadd.f32 %v674_v13, %v509_v16  ;;  %v638_v18 = vpop.permute.xlu0 %637 }
 0x114   : > { %v5633_v19 = vpop.eup %5632  ;;  %v675_v20 = vmul.f32 %v6066_v46, %v638_v18  ;;  %v473_v21 = vpop.permute.xlu1 %472 }
 0x115   : > { %v745_v22 = vadd.f32 %v6076_v53, %v706_v17  ;;  %v510_v23 = vmul.f32 %v6061_v45, %v473_v21  ;;  %5379 = vmatprep.mubr.msk.f32.mxu1 %vm794_vm0, %v5633_v19 }
 0x117   : > { %5640 = vtanh.f32 %v745_v22  ;;  %v707_v24 = vadd.f32 %v675_v20, %v510_v23 }
 0x118   : > { %v5635_v25 = vpop.eup %5634 }
 0x119   : > { %v746_v26 = vadd.f32 %v6076_v53, %v707_v24  ;;  %5380 = vmatmul.mubr.msk.f32.gmra.mxu1 %vm794_vm0, %v5635_v25 }
 0x11b   : > { %5642 = vtanh.f32 %v746_v26 }
 0x11c   : > { %v5637_v27 = vpop.eup %5636 }
 0x11d   : > { %5382 = vmatprep.mubr.msk.f32.mxu1 %vm794_vm0, %v5637_v27 }
 0x120   : > { %v5639_v28 = vpop.eup %5638 }
 0x121   : > { %5383 = vmatmul.mubr.msk.f32.gmra.mxu1 %vm794_vm0, %v5639_v28 }
 0x124   : > { %v5641_v46 = vpop.eup %5640 }
 0x125   : > { %5385 = vmatprep.mubr.msk.f32.mxu1 %vm794_vm0, %v5641_v46 }
 0x128   : > { %v5643_v45 = vpop.eup %5642 }
 0x129   : > { %5386 = vmatmul.mubr.msk.f32.gmra.mxu1 %vm794_vm0, %v5643_v45 }
 0x172   : > { %v5342_v53 = vpop.f32.mrf.mxu0 }
 0x173   : > { %v963_v30 = vadd.f32 %v5342_v53, %v6229_v29  ;;  %v5162_v53 = vld [vmem:[%s7453_s3 + $0xb8] sm:$0xff] }
 0x174   : > { %v957_v31 = vpop.f32.mrf.mxu0  ;;  %5452 = vmatprep.subr.mxu0 %v5162_v53 }
 0x175   : > { %v958_v32 = vadd.f32 %v6229_v29, %v957_v31  ;;  %5453 = vmatpush3.msra.mxu0 %v5162_v53 }
 0x177   : > { %5644 = vtanh.f32 %v958_v32 }
 0x178   : > { %5646 = vtanh.f32 %v963_v30 }
 0x179   : > { %v5345_v33 = vpop.f32.mrf.mxu0 }
 0x17a   : > { %v973_v34 = vadd.f32 %v5345_v33, %v6229_v29  ;;  %v5161_v33 = vld [vmem:[%s7453_s3 + $0xb0] sm:$0xff] }
 0x17b   : > { %v967_v35 = vpop.f32.mrf.mxu0  ;;  %5454 = vmatprep.subr.mxu0 %v5161_v33 }
 0x17c   : > { %v968_v36 = vadd.f32 %v6229_v29, %v967_v35  ;;  %5455 = vmatpush3.msra.mxu0 %v5161_v33 }
 0x17e   : > { %5648 = vtanh.f32 %v968_v36  ;;  %v5160_v36 = vld [vmem:[%s7453_s3 + $0xa8] sm:$0xff] }
 0x17f   : > { %5650 = vtanh.f32 %v973_v34  ;;  %5456 = vmatprep.subr.mxu0 %v5160_v36 }
 0x180   : > { %5457 = vmatpush3.msra.mxu0 %v5160_v36 }
 0x181   : > { %v5348_v37 = vpop.f32.mrf.mxu0 }
 0x182   : > { %v983_v38 = vadd.f32 %v5348_v37, %v6229_v29  ;;  %v5159_v37 = vld [vmem:[%s7453_s3 + $0xa0] sm:$0xff] }
 0x183   : > { %v977_v39 = vpop.f32.mrf.mxu0  ;;  %5458 = vmatprep.subr.mxu0 %v5159_v37 }
 0x184   : > { %v5645_v40 = vpop.eup %5644  ;;  %v978_v41 = vadd.f32 %v6229_v29, %v977_v39  ;;  %5459 = vmatpush3.msra.mxu0 %v5159_v37  ;;  %v5158_v39 = vld [vmem:[%s7453_s3 + $0x98] sm:$0xff] }
 0x185   : > { %v5647_v42 = vpop.eup %5646  ;;  %5404 = vmatprep.mubr.msk.f32.mxu1 %vm794_vm0, %v5645_v40  ;;  %5460 = vmatprep.subr.mxu0 %v5158_v39  ;;  %v5157_v40 = vld [vmem:[%s7453_s3 + $0x90] sm:$0xff] }
 0x186   : > { %5652 = vtanh.f32 %v978_v41  ;;  %5405 = vmatmul.mubr.msk.f32.vlgmr.msra.gmra.mxu1 %vm794_vm0, %v5647_v42  ;;  %5461 = vmatpush3.msra.mxu0 %v5158_v39 }
 0x187   : > { %5654 = vtanh.f32 %v983_v38  ;;  %5462 = vmatprep.subr.mxu0 %v5157_v40 }
 0x188   : > { %5463 = vmatpush3.msra.mxu0 %v5157_v40 }
 0x189   : > { %v5351_v43 = vpop.f32.mrf.mxu0 }
 0x18a   : > { %v993_v47 = vadd.f32 %v5351_v43, %v6229_v29 }
 0x18b   : > { %v5649_v44 = vpop.eup %5648  ;;  %v987_v48 = vpop.f32.mrf.mxu0 }
 0x18c   : > { %v5651_v49 = vpop.eup %5650  ;;  %v988_v50 = vadd.f32 %v6229_v29, %v987_v48  ;;  %5407 = vmatprep.mubr.msk.f32.mxu1 %vm794_vm0, %v5649_v44  ;;  %v5156_v48 = vld [vmem:[%s7453_s3 + $0x88] sm:$0xff] }
 0x18d   : > { %5408 = vmatmul.mubr.msk.f32.gmra.mxu1 %vm794_vm0, %v5651_v49  ;;  %5464 = vmatprep.subr.mxu0 %v5156_v48  ;;  %v5155_v49 = vld [vmem:[%s7453_s3 + $0x80] sm:$0xff] }
 0x18e   : > { %5656 = vtanh.f32 %v988_v50  ;;  %5465 = vmatpush3.msra.mxu0 %v5156_v48 }
 0x18f   : > { %5658 = vtanh.f32 %v993_v47  ;;  %5466 = vmatprep.subr.mxu0 %v5155_v49 }
 0x190   : > { %5467 = vmatpush3.msra.mxu0 %v5155_v49 }
 0x191   : > { %v5354_v51 = vpop.f32.mrf.mxu0 }
 0x192   : > { %v1003_v54 = vadd.f32 %v5354_v51, %v6229_v29 }
 0x193   : > { %v5653_v52 = vpop.eup %5652  ;;  %v997_v55 = vpop.f32.mrf.mxu0 }
 0x194   : > { %v5655_v56 = vpop.eup %5654  ;;  %v998_v57 = vadd.f32 %v6229_v29, %v997_v55  ;;  %5410 = vmatprep.mubr.msk.f32.mxu1 %vm794_vm0, %v5653_v52 }
 0x195   : > { %5411 = vmatmul.mubr.msk.f32.gmra.mxu1 %vm794_vm0, %v5655_v56 }
 0x196   : > { %5660 = vtanh.f32 %v998_v57 }
 0x197   : > { %5662 = vtanh.f32 %v1003_v54 }
 0x199   : > { %v5357_v58 = vpop.f32.mrf.mxu0 }
 0x19a   : > { %v1013_v60 = vadd.f32 %v5357_v58, %v6229_v29 }
 0x19b   : > { %v5657_v59 = vpop.eup %5656  ;;  %v1007_v61 = vpop.f32.mrf.mxu0 }
 0x19c   : > { %v5659_v62 = vpop.eup %5658  ;;  %v1008_v63 = vadd.f32 %v6229_v29, %v1007_v61  ;;  %5413 = vmatprep.mubr.msk.f32.mxu1 %vm794_vm0, %v5657_v59 }
 0x19d   : > { %5414 = vmatmul.mubr.msk.f32.gmra.mxu1 %vm794_vm0, %v5659_v62 }
 0x19e   : > { %5664 = vtanh.f32 %v1008_v63 }
 0x19f   : > { %5666 = vtanh.f32 %v1013_v60 }
 0x1a1   : > { %v5360_v0 = vpop.f32.mrf.mxu0 }
 0x1a2   : > { %v1023_v2 = vadd.f32 %v5360_v0, %v6229_v29 }
 0x1a3   : > { %v5661_v1 = vpop.eup %5660  ;;  %v1017_v3 = vpop.f32.mrf.mxu0 }
 0x1a4   : > { %v5663_v4 = vpop.eup %5662  ;;  %v1018_v5 = vadd.f32 %v6229_v29, %v1017_v3  ;;  %5416 = vmatprep.mubr.msk.f32.mxu1 %vm794_vm0, %v5661_v1 }
 0x1a5   : > { %5417 = vmatmul.mubr.msk.f32.gmra.mxu1 %vm794_vm0, %v5663_v4 }
 0x1a6   : > { %5668 = vtanh.f32 %v1018_v5 }
 0x1a7   : > { %5670 = vtanh.f32 %v1023_v2 }
 0x1a9   : > { %v5363_v6 = vpop.f32.mrf.mxu0 }
 0x1aa   : > { %v1033_v8 = vadd.f32 %v5363_v6, %v6229_v29 }
 0x1ab   : > { %v5665_v7 = vpop.eup %5664  ;;  %v1027_v9 = vpop.f32.mrf.mxu0 }
 0x1ac   : > { %v5667_v10 = vpop.eup %5666  ;;  %v1028_v11 = vadd.f32 %v6229_v29, %v1027_v9  ;;  %5419 = vmatprep.mubr.msk.f32.mxu1 %vm794_vm0, %v5665_v7 }
 0x1ad   : > { %5420 = vmatmul.mubr.msk.f32.gmra.mxu1 %vm794_vm0, %v5667_v10 }
 0x1ae   : > { %5672 = vtanh.f32 %v1028_v11 }
 0x1af   : > { %5674 = vtanh.f32 %v1033_v8 }
 0x1b1   : > { %v5366_v12 = vpop.f32.mrf.mxu1 }
 0x1b2   : > { %v1043_v14 = vadd.f32 %v5366_v12, %v6229_v29 }
 0x1b3   : > { %v5669_v13 = vpop.eup %5668  ;;  %v1037_v15 = vpop.f32.mrf.mxu1 }
 0x1b4   : > { %v5671_v16 = vpop.eup %5670  ;;  %v1038_v17 = vadd.f32 %v6229_v29, %v1037_v15  ;;  %5422 = vmatprep.mubr.msk.f32.mxu1 %vm794_vm0, %v5669_v13 }
 0x1b5   : > { %5423 = vmatmul.mubr.msk.f32.gmra.mxu1 %vm794_vm0, %v5671_v16 }
 0x1b6   : > { %5676 = vtanh.f32 %v1038_v17 }
 0x1b7   : > { %5678 = vtanh.f32 %v1043_v14 }
 0x1b9   : > { %v5369_v18 = vpop.f32.mrf.mxu1 }
 0x1ba   : > { %v1053_v20 = vadd.f32 %v5369_v18, %v6229_v29 }
 0x1bb   : > { %v5673_v19 = vpop.eup %5672  ;;  %v1047_v21 = vpop.f32.mrf.mxu1 }
 0x1bc   : > { %v5675_v22 = vpop.eup %5674  ;;  %v1048_v23 = vadd.f32 %v6229_v29, %v1047_v21  ;;  %5425 = vmatprep.mubr.msk.f32.mxu1 %vm794_vm0, %v5673_v19 }
 0x1bd   : > { %5426 = vmatmul.mubr.msk.f32.gmra.mxu1 %vm794_vm0, %v5675_v22 }
 0x1be   : > { %5680 = vtanh.f32 %v1048_v23 }
 0x1bf   : > { %5682 = vtanh.f32 %v1053_v20 }
 0x1c1   : > { %v5372_v24 = vpop.f32.mrf.mxu1 }
 0x1c2   : > { %v1063_v26 = vadd.f32 %v5372_v24, %v6229_v29 }
 0x1c3   : > { %v5677_v25 = vpop.eup %5676  ;;  %v1057_v27 = vpop.f32.mrf.mxu1 }
 0x1c4   : > { %v5679_v28 = vpop.eup %5678  ;;  %v1058_v46 = vadd.f32 %v6229_v29, %v1057_v27  ;;  %5428 = vmatprep.mubr.msk.f32.mxu1 %vm794_vm0, %v5677_v25 }
 0x1c5   : > { %5429 = vmatmul.mubr.msk.f32.gmra.mxu1 %vm794_vm0, %v5679_v28 }
 0x1c6   : > { %5684 = vtanh.f32 %v1058_v46 }
 0x1c7   : > { %5686 = vtanh.f32 %v1063_v26 }
 0x1c9   : > { %v5375_v45 = vpop.f32.mrf.mxu1 }
 0x1ca   : > { %v1073_v31 = vadd.f32 %v5375_v45, %v6229_v29 }
 0x1cb   : > { %v5681_v30 = vpop.eup %5680  ;;  %v1067_v32 = vpop.f32.mrf.mxu1 }
 0x1cc   : > { %v5683_v34 = vpop.eup %5682  ;;  %v1068_v35 = vadd.f32 %v6229_v29, %v1067_v32  ;;  %5431 = vmatprep.mubr.msk.f32.mxu1 %vm794_vm0, %v5681_v30 }
 0x1cd   : > { %5432 = vmatmul.mubr.msk.f32.gmra.mxu1 %vm794_vm0, %v5683_v34 }
 0x1ce   : > { %5688 = vtanh.f32 %v1068_v35 }
 0x1cf   : > { %5690 = vtanh.f32 %v1073_v31 }
 0x1d1   : > { %v5378_v38 = vpop.f32.mrf.mxu1 }
 0x1d2   : > { %v1083_v42 = vadd.f32 %v5378_v38, %v6229_v29 }
 0x1d3   : > { %v5685_v41 = vpop.eup %5684  ;;  %v1077_v43 = vpop.f32.mrf.mxu1 }
 0x1d4   : > { %v5687_v44 = vpop.eup %5686  ;;  %v1078_v47 = vadd.f32 %v6229_v29, %v1077_v43  ;;  %5434 = vmatprep.mubr.msk.f32.mxu1 %vm794_vm0, %v5685_v41 }
 0x1d5   : > { %5435 = vmatmul.mubr.msk.f32.gmra.mxu1 %vm794_vm0, %v5687_v44 }
 0x1d6   : > { %5692 = vtanh.f32 %v1078_v47 }
 0x1d7   : > { %5694 = vtanh.f32 %v1083_v42 }
 0x1d9   : > { %v5381_v50 = vpop.f32.mrf.mxu1 }
 0x1da   : > { %v1093_v52 = vadd.f32 %v5381_v50, %v6229_v29 }
 0x1db   : > { %v5689_v51 = vpop.eup %5688  ;;  %v1087_v54 = vpop.f32.mrf.mxu1 }
 0x1dc   : > { %v5691_v55 = vpop.eup %5690  ;;  %v1088_v56 = vadd.f32 %v6229_v29, %v1087_v54  ;;  %5437 = vmatprep.mubr.msk.f32.mxu1 %vm794_vm0, %v5689_v51 }
 0x1dd   : > { %5438 = vmatmul.mubr.msk.f32.gmra.mxu1 %vm794_vm0, %v5691_v55 }
 0x1de   : > { %5696 = vtanh.f32 %v1088_v56 }
 0x1df   : > { %5698 = vtanh.f32 %v1093_v52 }
 0x1e1   : > { %v5384_v57 = vpop.f32.mrf.mxu1 }
 0x1e2   : > { %v1103_v59 = vadd.f32 %v5384_v57, %v6229_v29 }
 0x1e3   : > { %v5693_v58 = vpop.eup %5692  ;;  %v1097_v60 = vpop.f32.mrf.mxu1 }
 0x1e4   : > { %v5695_v61 = vpop.eup %5694  ;;  %v1098_v62 = vadd.f32 %v6229_v29, %v1097_v60  ;;  %5440 = vmatprep.mubr.msk.f32.mxu1 %vm794_vm0, %v5693_v58 }
 0x1e5   : > { %5441 = vmatmul.mubr.msk.f32.gmra.mxu1 %vm794_vm0, %v5695_v61 }
 0x1e6   : > { %5700 = vtanh.f32 %v1098_v62 }
 0x1e7   : > { %5702 = vtanh.f32 %v1103_v59 }
 0x1e9   : > { %v5387_v63 = vpop.f32.mrf.mxu1 }
 0x1ea   : > { %v1113_v1 = vadd.f32 %v5387_v63, %v6229_v29 }
 0x1eb   : > { %v5697_v0 = vpop.eup %5696  ;;  %v1107_v2 = vpop.f32.mrf.mxu1 }
 0x1ec   : > { %v5699_v3 = vpop.eup %5698  ;;  %v1108_v4 = vadd.f32 %v6229_v29, %v1107_v2  ;;  %5443 = vmatprep.mubr.msk.f32.mxu1 %vm794_vm0, %v5697_v0  ;;  %v6322_v29 = vld [vmem:[%s7454_s4 + $0x1] ss:$0 sm:$0xff] }
 0x1ed   : > { %5444 = vmatmul.mubr.msk.f32.gmra.mxu1 %vm794_vm0, %v5699_v3 }
 0x1ee   : > { %5704 = vtanh.f32 %v1108_v4 }
 0x1ef   : > { %5706 = vtanh.f32 %v1113_v1 }
 0x1f3   : > { %v5701_v5 = vpop.eup %5700 }
 0x1f4   : > { %v5703_v6 = vpop.eup %5702  ;;  %5446 = vmatprep.mubr.msk.f32.mxu1 %vm794_vm0, %v5701_v5 }
 0x1f5   : > { %5447 = vmatmul.mubr.msk.f32.gmra.mxu1 %vm794_vm0, %v5703_v6 }
 0x1fb   : > { %v5705_v7 = vpop.eup %5704 }
 0x1fc   : > { %v5707_v8 = vpop.eup %5706  ;;  %5449 = vmatprep.mubr.msk.f32.mxu1 %vm794_vm0, %v5705_v7 }
 0x1fd   : > { %5450 = vmatmul.mubr.msk.f32.gmra.mxu1 %vm794_vm0, %v5707_v8 }
 0x246   : > { %v5406_v9 = vpop.f32.mrf.mxu1 }
 0x247   : > { %v1333_v10 = vadd.f32 %v5406_v9, %v6322_v29 }
 0x248   : > { %v1327_v11 = vpop.f32.mrf.mxu1 }
 0x249   : > { %v1328_v12 = vadd.f32 %v6322_v29, %v1327_v11 }
 0x24b   : > { %5708 = vtanh.f32 %v1328_v12 }
 0x24c   : > { %5710 = vtanh.f32 %v1333_v10 }
 0x24d   : > { %v5409_v13 = vpop.f32.mrf.mxu1 }
 0x24e   : > { %v1343_v14 = vadd.f32 %v5409_v13, %v6322_v29 }
 0x24f   : > { %v1337_v15 = vpop.f32.mrf.mxu1 }
 0x250   : > { %v1338_v16 = vadd.f32 %v6322_v29, %v1337_v15 }
 0x252   : > { %5712 = vtanh.f32 %v1338_v16 }
 0x253   : > { %5714 = vtanh.f32 %v1343_v14 }
 0x255   : > { %v5412_v17 = vpop.f32.mrf.mxu1 }
 0x256   : > { %v1353_v18 = vadd.f32 %v5412_v17, %v6322_v29 }
 0x257   : > { %v1347_v19 = vpop.f32.mrf.mxu1 }
 0x258   : > { %v5709_v20 = vpop.eup %5708  ;;  %v1348_v21 = vadd.f32 %v6322_v29, %v1347_v19 }
 0x259   : > { %v5711_v22 = vpop.eup %5710  ;;  %5468 = vmatprep.mubr.msk.f32.mxu0 %vm794_vm0, %v5709_v20 }
 0x25a   : > { %5716 = vtanh.f32 %v1348_v21  ;;  %5469 = vmatmul.mubr.msk.f32.vlgmr.msra.gmra.mxu0 %vm794_vm0, %v5711_v22 }
 0x25b   : > { %5718 = vtanh.f32 %v1353_v18 }
 0x25d   : > { %v5415_v23 = vpop.f32.mrf.mxu1 }
 0x25e   : > { %v1363_v25 = vadd.f32 %v5415_v23, %v6322_v29 }
 0x25f   : > { %v5713_v24 = vpop.eup %5712  ;;  %v1357_v26 = vpop.f32.mrf.mxu1 }
 0x260   : > { %v5715_v27 = vpop.eup %5714  ;;  %v1358_v28 = vadd.f32 %v6322_v29, %v1357_v26  ;;  %5471 = vmatprep.mubr.msk.f32.mxu0 %vm794_vm0, %v5713_v24 }
 0x261   : > { %5472 = vmatmul.mubr.msk.f32.gmra.mxu0 %vm794_vm0, %v5715_v27 }
 0x262   : > { %5720 = vtanh.f32 %v1358_v28 }
 0x263   : > { %5722 = vtanh.f32 %v1363_v25 }
 0x265   : > { %v5418_v46 = vpop.f32.mrf.mxu1 }
 0x266   : > { %v1373_v53 = vadd.f32 %v5418_v46, %v6322_v29 }
 0x267   : > { %v5717_v45 = vpop.eup %5716  ;;  %v1367_v30 = vpop.f32.mrf.mxu1 }
 0x268   : > { %v5719_v31 = vpop.eup %5718  ;;  %v1368_v32 = vadd.f32 %v6322_v29, %v1367_v30  ;;  %5474 = vmatprep.mubr.msk.f32.mxu0 %vm794_vm0, %v5717_v45 }
 0x269   : > { %5475 = vmatmul.mubr.msk.f32.gmra.mxu0 %vm794_vm0, %v5719_v31 }
 0x26a   : > { %5724 = vtanh.f32 %v1368_v32 }
 0x26b   : > { %5726 = vtanh.f32 %v1373_v53 }
 0x26d   : > { %v5421_v33 = vpop.f32.mrf.mxu1 }
 0x26e   : > { %v1383_v35 = vadd.f32 %v5421_v33, %v6322_v29 }
 0x26f   : > { %v5721_v34 = vpop.eup %5720  ;;  %v1377_v36 = vpop.f32.mrf.mxu1 }
 0x270   : > { %v5723_v37 = vpop.eup %5722  ;;  %v1378_v38 = vadd.f32 %v6322_v29, %v1377_v36  ;;  %5477 = vmatprep.mubr.msk.f32.mxu0 %vm794_vm0, %v5721_v34 }
 0x271   : > { %5478 = vmatmul.mubr.msk.f32.gmra.mxu0 %vm794_vm0, %v5723_v37 }
 0x272   : > { %5728 = vtanh.f32 %v1378_v38 }
 0x273   : > { %5730 = vtanh.f32 %v1383_v35 }
 0x275   : > { %v5424_v39 = vpop.f32.mrf.mxu1 }
 0x276   : > { %v1393_v41 = vadd.f32 %v5424_v39, %v6322_v29 }
 0x277   : > { %v5725_v40 = vpop.eup %5724  ;;  %v1387_v42 = vpop.f32.mrf.mxu1 }
 0x278   : > { %v5727_v43 = vpop.eup %5726  ;;  %v1388_v44 = vadd.f32 %v6322_v29, %v1387_v42  ;;  %5480 = vmatprep.mubr.msk.f32.mxu0 %vm794_vm0, %v5725_v40 }
 0x279   : > { %5481 = vmatmul.mubr.msk.f32.gmra.mxu0 %vm794_vm0, %v5727_v43 }
 0x27a   : > { %5732 = vtanh.f32 %v1388_v44 }
 0x27b   : > { %5734 = vtanh.f32 %v1393_v41 }
 0x27d   : > { %v5427_v47 = vpop.f32.mrf.mxu1 }
 0x27e   : > { %v1403_v49 = vadd.f32 %v5427_v47, %v6322_v29 }
 0x27f   : > { %v5729_v48 = vpop.eup %5728  ;;  %v1397_v50 = vpop.f32.mrf.mxu1 }
 0x280   : > { %v5731_v51 = vpop.eup %5730  ;;  %v1398_v52 = vadd.f32 %v6322_v29, %v1397_v50  ;;  %5483 = vmatprep.mubr.msk.f32.mxu0 %vm794_vm0, %v5729_v48  ;;  %v6400_v50 = vld [vmem:[%s7455_s5] ss:$0 sm:$0xff] }
 0x281   : > { %5484 = vmatmul.mubr.msk.f32.gmra.mxu0 %vm794_vm0, %v5731_v51 }
 0x282   : > { %5736 = vtanh.f32 %v1398_v52 }
 0x283   : > { %5738 = vtanh.f32 %v1403_v49 }
 0x285   : > { %v5430_v54 = vpop.f32.mrf.mxu1 }
 0x286   : > { %v1413_v56 = vadd.f32 %v5430_v54, %v6322_v29 }
 0x287   : > { %v5733_v55 = vpop.eup %5732  ;;  %v1407_v57 = vpop.f32.mrf.mxu1 }
 0x288   : > { %v5735_v58 = vpop.eup %5734  ;;  %v1408_v59 = vadd.f32 %v6322_v29, %v1407_v57  ;;  %5486 = vmatprep.mubr.msk.f32.mxu0 %vm794_vm0, %v5733_v55 }
 0x289   : > { %5487 = vmatmul.mubr.msk.f32.gmra.mxu0 %vm794_vm0, %v5735_v58 }
 0x28a   : > { %5740 = vtanh.f32 %v1408_v59 }
 0x28b   : > { %5742 = vtanh.f32 %v1413_v56 }
 0x28d   : > { %v5433_v60 = vpop.f32.mrf.mxu1 }
 0x28e   : > { %v1423_v62 = vadd.f32 %v5433_v60, %v6322_v29 }
 0x28f   : > { %v5737_v61 = vpop.eup %5736  ;;  %v1417_v63 = vpop.f32.mrf.mxu1 }
 0x290   : > { %v5739_v0 = vpop.eup %5738  ;;  %v1418_v1 = vadd.f32 %v6322_v29, %v1417_v63  ;;  %5489 = vmatprep.mubr.msk.f32.mxu0 %vm794_vm0, %v5737_v61 }
 0x291   : > { %5490 = vmatmul.mubr.msk.f32.gmra.mxu0 %vm794_vm0, %v5739_v0 }
 0x292   : > { %5744 = vtanh.f32 %v1418_v1 }
 0x293   : > { %5746 = vtanh.f32 %v1423_v62 }
 0x295   : > { %v5436_v2 = vpop.f32.mrf.mxu1 }
 0x296   : > { %v1433_v4 = vadd.f32 %v5436_v2, %v6322_v29 }
 0x297   : > { %v5741_v3 = vpop.eup %5740  ;;  %v1427_v5 = vpop.f32.mrf.mxu1 }
 0x298   : > { %v5743_v6 = vpop.eup %5742  ;;  %v1428_v7 = vadd.f32 %v6322_v29, %v1427_v5  ;;  %5492 = vmatprep.mubr.msk.f32.mxu0 %vm794_vm0, %v5741_v3 }
 0x299   : > { %5493 = vmatmul.mubr.msk.f32.gmra.mxu0 %vm794_vm0, %v5743_v6 }
 0x29a   : > { %5748 = vtanh.f32 %v1428_v7 }
 0x29b   : > { %5750 = vtanh.f32 %v1433_v4 }
 0x29d   : > { %v5439_v8 = vpop.f32.mrf.mxu1 }
 0x29e   : > { %v1443_v10 = vadd.f32 %v5439_v8, %v6322_v29 }
 0x29f   : > { %v5745_v9 = vpop.eup %5744  ;;  %v1437_v11 = vpop.f32.mrf.mxu1 }
 0x2a0   : > { %v5747_v12 = vpop.eup %5746  ;;  %v1438_v13 = vadd.f32 %v6322_v29, %v1437_v11  ;;  %5495 = vmatprep.mubr.msk.f32.mxu0 %vm794_vm0, %v5745_v9 }
 0x2a1   : > { %5496 = vmatmul.mubr.msk.f32.gmra.mxu0 %vm794_vm0, %v5747_v12 }
 0x2a2   : > { %5752 = vtanh.f32 %v1438_v13 }
 0x2a3   : > { %5754 = vtanh.f32 %v1443_v10 }
 0x2a5   : > { %v5442_v14 = vpop.f32.mrf.mxu1 }
 0x2a6   : > { %v1453_v16 = vadd.f32 %v5442_v14, %v6322_v29 }
 0x2a7   : > { %v5749_v15 = vpop.eup %5748  ;;  %v1447_v17 = vpop.f32.mrf.mxu1 }
 0x2a8   : > { %v5751_v18 = vpop.eup %5750  ;;  %v1448_v19 = vadd.f32 %v6322_v29, %v1447_v17  ;;  %5498 = vmatprep.mubr.msk.f32.mxu0 %vm794_vm0, %v5749_v15 }
 0x2a9   : > { %5499 = vmatmul.mubr.msk.f32.gmra.mxu0 %vm794_vm0, %v5751_v18 }
 0x2aa   : > { %5756 = vtanh.f32 %v1448_v19 }
 0x2ab   : > { %5758 = vtanh.f32 %v1453_v16 }
 0x2ad   : > { %v5445_v20 = vpop.f32.mrf.mxu1 }
 0x2ae   : > { %v1463_v22 = vadd.f32 %v5445_v20, %v6322_v29 }
 0x2af   : > { %v5753_v21 = vpop.eup %5752  ;;  %v1457_v23 = vpop.f32.mrf.mxu1 }
 0x2b0   : > { %v5755_v24 = vpop.eup %5754  ;;  %v1458_v25 = vadd.f32 %v6322_v29, %v1457_v23  ;;  %5501 = vmatprep.mubr.msk.f32.mxu0 %vm794_vm0, %v5753_v21 }
 0x2b1   : > { %5502 = vmatmul.mubr.msk.f32.gmra.mxu0 %vm794_vm0, %v5755_v24 }
 0x2b2   : > { %5760 = vtanh.f32 %v1458_v25 }
 0x2b3   : > { %5762 = vtanh.f32 %v1463_v22 }
 0x2b5   : > { %v5448_v26 = vpop.f32.mrf.mxu1 }
 0x2b6   : > { %v1473_v28 = vadd.f32 %v5448_v26, %v6322_v29 }
 0x2b7   : > { %v5757_v27 = vpop.eup %5756  ;;  %v1467_v46 = vpop.f32.mrf.mxu1 }
 0x2b8   : > { %v5759_v45 = vpop.eup %5758  ;;  %v1468_v53 = vadd.f32 %v6322_v29, %v1467_v46  ;;  %5504 = vmatprep.mubr.msk.f32.mxu0 %vm794_vm0, %v5757_v27 }
 0x2b9   : > { %5505 = vmatmul.mubr.msk.f32.gmra.mxu0 %vm794_vm0, %v5759_v45 }
 0x2ba   : > { %5764 = vtanh.f32 %v1468_v53 }
 0x2bb   : > { %5766 = vtanh.f32 %v1473_v28 }
 0x2bd   : > { %v5451_v30 = vpop.f32.mrf.mxu1 }
 0x2be   : > { %v1483_v32 = vadd.f32 %v5451_v30, %v6322_v29 }
 0x2bf   : > { %v5761_v31 = vpop.eup %5760  ;;  %v1477_v33 = vpop.f32.mrf.mxu1 }
 0x2c0   : > { %v5763_v34 = vpop.eup %5762  ;;  %v1478_v35 = vadd.f32 %v6322_v29, %v1477_v33  ;;  %5507 = vmatprep.mubr.msk.f32.mxu0 %vm794_vm0, %v5761_v31  ;;  %v6391_v29 = vld [vmem:[%s7454_s4 + $0x2] ss:$0 sm:$0xff] }
 0x2c1   : > { %5508 = vmatmul.mubr.msk.f32.gmra.mxu0 %vm794_vm0, %v5763_v34 }
 0x2c2   : > { %5768 = vtanh.f32 %v1478_v35 }
 0x2c3   : > { %5770 = vtanh.f32 %v1483_v32 }
 0x2c7   : > { %v5765_v36 = vpop.eup %5764 }
 0x2c8   : > { %v5767_v37 = vpop.eup %5766  ;;  %5510 = vmatprep.mubr.msk.f32.mxu0 %vm794_vm0, %v5765_v36 }
 0x2c9   : > { %5511 = vmatmul.mubr.msk.f32.gmra.mxu0 %vm794_vm0, %v5767_v37 }
 0x2cf   : > { %v5769_v38 = vpop.eup %5768 }
 0x2d0   : > { %v5771_v39 = vpop.eup %5770  ;;  %5513 = vmatprep.mubr.msk.f32.mxu0 %vm794_vm0, %v5769_v38 }
 0x2d1   : > { %5514 = vmatmul.mubr.msk.f32.gmra.mxu0 %vm794_vm0, %v5771_v39 }
 0x31a   : > { %v5470_v40 = vpop.f32.mrf.mxu0 }
 0x31b   : > { %v1703_v41 = vadd.f32 %v5470_v40, %v6391_v29 }
 0x31c   : > { %v1697_v42 = vpop.f32.mrf.mxu0 }
 0x31d   : > { %5772 = vtanh.f32 %v1703_v41  ;;  %v1698_v43 = vadd.f32 %v6391_v29, %v1697_v42 }
 0x31f   : > { %5774 = vtanh.f32 %v1698_v43 }
 0x321   : > { %v5473_v44 = vpop.f32.mrf.mxu0 }
 0x322   : > { %v1713_v47 = vadd.f32 %v5473_v44, %v6391_v29 }
 0x323   : > { %v1707_v48 = vpop.f32.mrf.mxu0 }
 0x324   : > { %5776 = vtanh.f32 %v1713_v47  ;;  %v1708_v49 = vadd.f32 %v6391_v29, %v1707_v48 }
 0x326   : > { %5778 = vtanh.f32 %v1708_v49 }
 0x329   : > { %v5476_v51 = vpop.f32.mrf.mxu0 }
 0x32a   : > { %v5773_v52 = vpop.eup %5772  ;;  %v1723_v54 = vadd.f32 %v5476_v51, %v6391_v29 }
 0x32b   : > { %v1717_v55 = vpop.f32.mrf.mxu0  ;;  %v1896_v56 = vmul.f32 %v5773_v52, %v6400_v50 }
 0x32c   : > { %v5775_v57 = vpop.eup %5774  ;;  %5780 = vtanh.f32 %v1723_v54  ;;  %v1718_v58 = vadd.f32 %v6391_v29, %v1717_v55 }
 0x32d   : > { %v1930_v59 = vsel %vm794_vm0, %v1896_v56, 0.0  ;;  %v1895_v60 = vmul.f32 %v5775_v57, %v6400_v50 }
 0x32e   : > { %5782 = vtanh.f32 %v1718_v58  ;;  %1931 = vadd.xlane.f32.xlu0 %v1930_v59 }
 0x32f   : > { %v1927_v61 = vsel %vm794_vm0, %v1895_v60, 0.0 }
 0x330   : > { %1928 = vadd.xlane.f32.xlu1 %v1927_v61 }
 0x331   : > { %v5777_v62 = vpop.eup %5776  ;;  %v5479_v63 = vpop.f32.mrf.mxu0 }
 0x332   : > { %v1733_v0 = vadd.f32 %v5479_v63, %v6391_v29  ;;  %v1898_v1 = vmul.f32 %v5777_v62, %v6400_v50 }
 0x333   : > { %v5779_v2 = vpop.eup %5778  ;;  %v1727_v3 = vpop.f32.mrf.mxu0 }
 0x334   : > { %5784 = vtanh.f32 %v1733_v0  ;;  %v1728_v4 = vadd.f32 %v6391_v29, %v1727_v3  ;;  %v1936_v5 = vsel %vm794_vm0, %v1898_v1, 0.0  ;;  %v1897_v6 = vmul.f32 %v5779_v2, %v6400_v50 }
 0x335   : > { %1937 = vadd.xlane.f32.xlu1 %v1936_v5 }
 0x336   : > { %5786 = vtanh.f32 %v1728_v4  ;;  %v1933_v7 = vsel %vm794_vm0, %v1897_v6, 0.0 }
 0x337   : > { %1934 = vadd.xlane.f32.xlu0 %v1933_v7 }
 0x339   : > { %v5781_v8 = vpop.eup %5780  ;;  %v5482_v9 = vpop.f32.mrf.mxu0 }
 0x33a   : > { %v1743_v10 = vadd.f32 %v5482_v9, %v6391_v29  ;;  %v1900_v11 = vmul.f32 %v5781_v8, %v6400_v50 }
 0x33b   : > { %v5783_v12 = vpop.eup %5782  ;;  %v1737_v13 = vpop.f32.mrf.mxu0 }
 0x33c   : > { %5788 = vtanh.f32 %v1743_v10  ;;  %v1738_v14 = vadd.f32 %v6391_v29, %v1737_v13  ;;  %v1942_v15 = vsel %vm794_vm0, %v1900_v11, 0.0  ;;  %v1899_v16 = vmul.f32 %v5783_v12, %v6400_v50 }
 0x33d   : > { %1943 = vadd.xlane.f32.xlu1 %v1942_v15 }
 0x33e   : > { %5790 = vtanh.f32 %v1738_v14  ;;  %v1939_v17 = vsel %vm794_vm0, %v1899_v16, 0.0 }
 0x33f   : > { %1940 = vadd.xlane.f32.xlu0 %v1939_v17 }
 0x341   : > { %v5785_v18 = vpop.eup %5784  ;;  %v5485_v19 = vpop.f32.mrf.mxu0 }
 0x342   : > { %v1753_v20 = vadd.f32 %v5485_v19, %v6391_v29  ;;  %v1902_v21 = vmul.f32 %v5785_v18, %v6400_v50 }
 0x343   : > { %v5787_v22 = vpop.eup %5786  ;;  %v1747_v23 = vpop.f32.mrf.mxu0 }
 0x344   : > { %5792 = vtanh.f32 %v1753_v20  ;;  %v1748_v24 = vadd.f32 %v6391_v29, %v1747_v23  ;;  %v1948_v25 = vsel %vm794_vm0, %v1902_v21, 0.0  ;;  %v1901_v26 = vmul.f32 %v5787_v22, %v6400_v50 }
 0x345   : > { %1949 = vadd.xlane.f32.xlu1 %v1948_v25 }
 0x346   : > { %5794 = vtanh.f32 %v1748_v24  ;;  %v1945_v27 = vsel %vm794_vm0, %v1901_v26, 0.0 }
 0x347   : > { %1946 = vadd.xlane.f32.xlu0 %v1945_v27 }
 0x349   : > { %v5789_v28 = vpop.eup %5788  ;;  %v5488_v46 = vpop.f32.mrf.mxu0 }
 0x34a   : > { %v1763_v45 = vadd.f32 %v5488_v46, %v6391_v29  ;;  %v1904_v53 = vmul.f32 %v5789_v28, %v6400_v50 }
 0x34b   : > { %v5791_v30 = vpop.eup %5790  ;;  %v1757_v31 = vpop.f32.mrf.mxu0 }
 0x34c   : > { %5796 = vtanh.f32 %v1763_v45  ;;  %v1758_v32 = vadd.f32 %v6391_v29, %v1757_v31  ;;  %v1954_v33 = vsel %vm794_vm0, %v1904_v53, 0.0  ;;  %v1903_v34 = vmul.f32 %v5791_v30, %v6400_v50 }
 0x34d   : > { %1955 = vadd.xlane.f32.xlu1 %v1954_v33 }
 0x34e   : > { %5798 = vtanh.f32 %v1758_v32  ;;  %v1951_v35 = vsel %vm794_vm0, %v1903_v34, 0.0 }
 0x34f   : > { %1952 = vadd.xlane.f32.xlu0 %v1951_v35 }
 0x351   : > { %v5793_v36 = vpop.eup %5792  ;;  %v5491_v37 = vpop.f32.mrf.mxu0 }
 0x352   : > { %v1773_v38 = vadd.f32 %v5491_v37, %v6391_v29  ;;  %v1906_v39 = vmul.f32 %v5793_v36, %v6400_v50 }
 0x353   : > { %v5795_v40 = vpop.eup %5794  ;;  %v1767_v41 = vpop.f32.mrf.mxu0 }
 0x354   : > { %5800 = vtanh.f32 %v1773_v38  ;;  %v1768_v42 = vadd.f32 %v6391_v29, %v1767_v41  ;;  %v1960_v43 = vsel %vm794_vm0, %v1906_v39, 0.0  ;;  %v1905_v44 = vmul.f32 %v5795_v40, %v6400_v50 }
 0x355   : > { %1961 = vadd.xlane.f32.xlu1 %v1960_v43 }
 0x356   : > { %5802 = vtanh.f32 %v1768_v42  ;;  %v1957_v47 = vsel %vm794_vm0, %v1905_v44, 0.0 }
 0x357   : > { %1958 = vadd.xlane.f32.xlu0 %v1957_v47 }
 0x359   : > { %v5797_v48 = vpop.eup %5796  ;;  %v5494_v49 = vpop.f32.mrf.mxu0 }
 0x35a   : > { %v1783_v51 = vadd.f32 %v5494_v49, %v6391_v29  ;;  %v1908_v52 = vmul.f32 %v5797_v48, %v6400_v50 }
 0x35b   : > { %v5799_v54 = vpop.eup %5798  ;;  %v1777_v55 = vpop.f32.mrf.mxu0 }
 0x35c   : > { %5804 = vtanh.f32 %v1783_v51  ;;  %v1778_v56 = vadd.f32 %v6391_v29, %v1777_v55  ;;  %v1966_v57 = vsel %vm794_vm0, %v1908_v52, 0.0  ;;  %v1907_v58 = vmul.f32 %v5799_v54, %v6400_v50 }
 0x35d   : > { %1967 = vadd.xlane.f32.xlu1 %v1966_v57 }
 0x35e   : > { %5806 = vtanh.f32 %v1778_v56  ;;  %v1963_v59 = vsel %vm794_vm0, %v1907_v58, 0.0 }
 0x35f   : > { %1964 = vadd.xlane.f32.xlu0 %v1963_v59 }
 0x361   : > { %v5801_v60 = vpop.eup %5800  ;;  %v5497_v61 = vpop.f32.mrf.mxu0 }
 0x362   : > { %v1793_v62 = vadd.f32 %v5497_v61, %v6391_v29  ;;  %v1910_v63 = vmul.f32 %v5801_v60, %v6400_v50 }
 0x363   : > { %v5803_v0 = vpop.eup %5802  ;;  %v1787_v1 = vpop.f32.mrf.mxu0 }
 0x364   : > { %5808 = vtanh.f32 %v1793_v62  ;;  %v1788_v2 = vadd.f32 %v6391_v29, %v1787_v1  ;;  %v1972_v3 = vsel %vm794_vm0, %v1910_v63, 0.0  ;;  %v1909_v4 = vmul.f32 %v5803_v0, %v6400_v50 }
 0x365   : > { %1973 = vadd.xlane.f32.xlu1 %v1972_v3 }
 0x366   : > { %5810 = vtanh.f32 %v1788_v2  ;;  %v1969_v5 = vsel %vm794_vm0, %v1909_v4, 0.0 }
 0x367   : > { %1970 = vadd.xlane.f32.xlu0 %v1969_v5  ;;  %v2023_v5 = vld [vmem:[#allocation2] sm:$0x1] }
 0x369   : > { %v5805_v6 = vpop.eup %5804  ;;  %v5500_v7 = vpop.f32.mrf.mxu0 }
 0x36a   : > { %v1803_v8 = vadd.f32 %v5500_v7, %v6391_v29  ;;  %v1912_v9 = vmul.f32 %v5805_v6, %v6400_v50 }
 0x36b   : > { %v5807_v10 = vpop.eup %5806  ;;  %v1797_v11 = vpop.f32.mrf.mxu0 }
 0x36c   : > { %5812 = vtanh.f32 %v1803_v8  ;;  %v1798_v12 = vadd.f32 %v6391_v29, %v1797_v11  ;;  %v1978_v13 = vsel %vm794_vm0, %v1912_v9, 0.0  ;;  %v1911_v14 = vmul.f32 %v5807_v10, %v6400_v50 }
 0x36d   : > { %1979 = vadd.xlane.f32.xlu1 %v1978_v13 }
 0x36e   : > { %5814 = vtanh.f32 %v1798_v12  ;;  %v1975_v15 = vsel %vm794_vm0, %v1911_v14, 0.0 }
 0x36f   : > { %1976 = vadd.xlane.f32.xlu0 %v1975_v15 }
 0x371   : > { %v5809_v16 = vpop.eup %5808  ;;  %v5503_v17 = vpop.f32.mrf.mxu0 }
 0x372   : > { %v1813_v18 = vadd.f32 %v5503_v17, %v6391_v29  ;;  %v1914_v19 = vmul.f32 %v5809_v16, %v6400_v50 }
 0x373   : > { %v5811_v20 = vpop.eup %5810  ;;  %v1807_v21 = vpop.f32.mrf.mxu0 }
 0x374   : > { %5816 = vtanh.f32 %v1813_v18  ;;  %v1808_v22 = vadd.f32 %v6391_v29, %v1807_v21  ;;  %v1984_v23 = vsel %vm794_vm0, %v1914_v19, 0.0  ;;  %v1913_v24 = vmul.f32 %v5811_v20, %v6400_v50 }
 0x375   : > { %1985 = vadd.xlane.f32.xlu1 %v1984_v23 }
 0x376   : > { %5818 = vtanh.f32 %v1808_v22  ;;  %v1981_v25 = vsel %vm794_vm0, %v1913_v24, 0.0 }
 0x377   : > { %1982 = vadd.xlane.f32.xlu0 %v1981_v25 }
 0x379   : > { %v5813_v26 = vpop.eup %5812  ;;  %v5506_v27 = vpop.f32.mrf.mxu0 }
 0x37a   : > { %v1823_v28 = vadd.f32 %v5506_v27, %v6391_v29  ;;  %v1916_v46 = vmul.f32 %v5813_v26, %v6400_v50 }
 0x37b   : > { %v5815_v45 = vpop.eup %5814  ;;  %v1817_v53 = vpop.f32.mrf.mxu0 }
 0x37c   : > { %5820 = vtanh.f32 %v1823_v28  ;;  %v1818_v30 = vadd.f32 %v6391_v29, %v1817_v53  ;;  %v1990_v31 = vsel %vm794_vm0, %v1916_v46, 0.0  ;;  %v1915_v32 = vmul.f32 %v5815_v45, %v6400_v50 }
 0x37d   : > { %1991 = vadd.xlane.f32.xlu1 %v1990_v31 }
 0x37e   : > { %5822 = vtanh.f32 %v1818_v30  ;;  %v1987_v33 = vsel %vm794_vm0, %v1915_v32, 0.0 }
 0x37f   : > { %1988 = vadd.xlane.f32.xlu0 %v1987_v33  ;;  %v2029_v33 = vlaneseq }
 0x381   : > { %v5817_v34 = vpop.eup %5816  ;;  %v5509_v35 = vpop.f32.mrf.mxu0 }
 0x382   : > { %v1833_v36 = vadd.f32 %v5509_v35, %v6391_v29  ;;  %v1918_v37 = vmul.f32 %v5817_v34, %v6400_v50 }
 0x383   : > { %v5819_v38 = vpop.eup %5818  ;;  %v1827_v39 = vpop.f32.mrf.mxu0 }
 0x384   : > { %5824 = vtanh.f32 %v1833_v36  ;;  %v1828_v40 = vadd.f32 %v6391_v29, %v1827_v39  ;;  %v1996_v41 = vsel %vm794_vm0, %v1918_v37, 0.0  ;;  %v1917_v42 = vmul.f32 %v5819_v38, %v6400_v50 }
 0x385   : > { %1997 = vadd.xlane.f32.xlu1 %v1996_v41  ;;  %v6495_v36 = vshrl.u32 %v2029_v33, 7  ;;  %v5900_v38 = vmov 1966171168  }
 0x386   : > { %5826 = vtanh.f32 %v1828_v40  ;;  %v1993_v43 = vsel %vm794_vm0, %v1917_v42, 0.0  ;;  %v3126_v39 = vunpack.c.l.s4 %v5900_v38 }
 0x387   : > { %1994 = vadd.xlane.f32.xlu0 %v1993_v43  ;;  %v6498_v41 = vsub.s32 0, %v6495_v36 }
 0x388   : > { %v3127_v43 = vunpack.c.0.s8 %v3126_v39 }
 0x389   : > { %v5821_v44 = vpop.eup %5820  ;;  %v5512_v47 = vpop.f32.mrf.mxu0 }
 0x38a   : > { %v1843_v48 = vadd.f32 %v5512_v47, %v6391_v29  ;;  %v1920_v49 = vmul.f32 %v5821_v44, %v6400_v50  ;;  %v6501_v47 = vsub.s32 1, %v6495_v36 }
 0x38b   : > { %v5823_v51 = vpop.eup %5822  ;;  %v1837_v52 = vpop.f32.mrf.mxu0 }
 0x38c   : > { %5828 = vtanh.f32 %v1843_v48  ;;  %v1838_v54 = vadd.f32 %v6391_v29, %v1837_v52  ;;  %v2002_v55 = vsel %vm794_vm0, %v1920_v49, 0.0  ;;  %v1919_v56 = vmul.f32 %v5823_v51, %v6400_v50 }
 0x38d   : > { %2003 = vadd.xlane.f32.xlu1 %v2002_v55  ;;  %v6507_v49 = vsub.s32 2, %v6495_v36  ;;  %v6510_v51 = vsub.s32 3, %v6495_v36  ;;  %v6513_v52 = vsub.s32 4, %v6495_v36  ;;  %v6516_v55 = vsub.s32 5, %v6495_v36 }
 0x38e   : > { %5830 = vtanh.f32 %v1838_v54  ;;  %v1999_v57 = vsel %vm794_vm0, %v1919_v56, 0.0  ;;  %v6519_v56 = vsub.s32 6, %v6495_v36 }
 0x391   : > { %v5825_v58 = vpop.eup %5824  ;;  %2000 = vadd.xlane.f32.xlu1 %v1999_v57  ;;  %v5515_v59 = vpop.f32.mrf.mxu0  ;;  %v6522_v57 = vsub.s32 7, %v6495_v36 }
 0x392   : > { %v1853_v60 = vadd.f32 %v5515_v59, %v6391_v29  ;;  %v1922_v61 = vmul.f32 %v5825_v58, %v6400_v50  ;;  %v6525_v58 = vsub.s32 %v3127_v43, %v6495_v36 }
 0x393   : > { %v5827_v62 = vpop.eup %5826  ;;  %v1847_v63 = vpop.f32.mrf.mxu0 }
 0x394   : > { %5832 = vtanh.f32 %v1853_v60  ;;  %v1848_v0 = vadd.f32 %v6391_v29, %v1847_v63  ;;  %v2008_v1 = vsel %vm794_vm0, %v1922_v61, 0.0  ;;  %v1921_v2 = vmul.f32 %v5827_v62, %v6400_v50 }
 0x395   : > { %2009 = vadd.xlane.f32.xlu1 %v2008_v1 }
 0x396   : > { %5834 = vtanh.f32 %v1848_v0  ;;  %v2005_v3 = vsel %vm794_vm0, %v1921_v2, 0.0 }
 0x399   : > { %v5829_v4 = vpop.eup %5828  ;;  %2006 = vadd.xlane.f32.xlu1 %v2005_v3 }
 0x39a   : > { %v1924_v6 = vmul.f32 %v5829_v4, %v6400_v50 }
 0x39b   : > { %v5831_v7 = vpop.eup %5830 }
 0x39c   : > { %v2014_v8 = vsel %vm794_vm0, %v1924_v6, 0.0  ;;  %v1923_v9 = vmul.f32 %v5831_v7, %v6400_v50 }
 0x39d   : > { %2026 = vperm.xlu0 %5579, %v2023_v5   ;;  %2015 = vadd.xlane.f32.xlu1 %v2014_v8 }
 0x39e   : > { %v2011_v29 = vsel %vm794_vm0, %v1923_v9, 0.0 }
 0x3a1   : > { %v5833_v10 = vpop.eup %5832  ;;  %2012 = vadd.xlane.f32.xlu1 %v2011_v29 }
 0x3a2   : > { %v1926_v11 = vmul.f32 %v5833_v10, %v6400_v50 }
 0x3a3   : > { %v5835_v12 = vpop.eup %5834 }
 0x3a4   : > { %v2020_v13 = vsel %vm794_vm0, %v1926_v11, 0.0  ;;  %v1925_v14 = vmul.f32 %v5835_v12, %v6400_v50 }
 0x3a5   : > { %2021 = vadd.xlane.f32.xlu1 %v2020_v13 }
 0x3a6   : > { %v2017_v15 = vsel %vm794_vm0, %v1925_v14, 0.0  ;;  %vm4993_vm0 = vcmp.lt.s32.totalorder %v2029_v33, 256 }
 0x3a9   : > { %2018 = vadd.xlane.f32.xlu1 %v2017_v15 }
 0x3b7   : > { %v1932_v17 = vpop.xlane.xlu0 %1931 }
 0x3b9   : > { %v1929_v16 = vpop.xlane.xlu1 %1928 }
 0x3be   : > { %v1938_v18 = vpop.xlane.xlu1 %1937 }
 0x3c0   : > { %v1935_v19 = vpop.xlane.xlu0 %1934 }
 0x3c6   : > { %v1944_v20 = vpop.xlane.xlu1 %1943 }
 0x3c8   : > { %v1941_v21 = vpop.xlane.xlu0 %1940 }
 0x3ce   : > { %v1950_v22 = vpop.xlane.xlu1 %1949 }
 0x3d0   : > { %v1947_v23 = vpop.xlane.xlu0 %1946 }
 0x3d6   : > { %v1956_v24 = vpop.xlane.xlu1 %1955 }
 0x3d8   : > { %v1953_v25 = vpop.xlane.xlu0 %1952 }
 0x3de   : > { %v1962_v26 = vpop.xlane.xlu1 %1961 }
 0x3e0   : > { %v1959_v27 = vpop.xlane.xlu0 %1958 }
 0x3e6   : > { %v1968_v28 = vpop.xlane.xlu1 %1967 }
 0x3e8   : > { %v1965_v46 = vpop.xlane.xlu0 %1964 }
 0x3ee   : > { %v1974_v45 = vpop.xlane.xlu1 %1973 }
 0x3f0   : > { %v1971_v50 = vpop.xlane.xlu0 %1970 }
 0x3f6   : > { %v1980_v53 = vpop.xlane.xlu1 %1979 }
 0x3f8   : > { %v1977_v30 = vpop.xlane.xlu0 %1976 }
 0x3fe   : > { %v1986_v31 = vpop.xlane.xlu1 %1985 }
 0x400   : > { %v1983_v32 = vpop.xlane.xlu0 %1982 }
 0x406   : > { %v1992_v34 = vpop.xlane.xlu1 %1991 }
 0x408   : > { %v1989_v35 = vpop.xlane.xlu0 %1988 }
 0x40e   : > { %v1998_v37 = vpop.xlane.xlu1 %1997 }
 0x410   : > { %v1995_v40 = vpop.xlane.xlu0 %1994 }
 0x416   : > { %v2004_v42 = vpop.xlane.xlu1 %2003 }
 0x418   : > { %v2027_v44 = vpop.permute.xlu0 %2026 }
 0x419   : > { %v6504_v48 = vrot.slane %v2027_v44, %v6498_v41 }
 0x41a   : > { %v2001_v54 = vpop.xlane.xlu1 %2000 }
 0x41b   : > { %v6528_v59 = vadd.f32 %v6504_v48, %v1929_v16  ;;  %v2034_v60 = vadd.f32 %v6504_v48, %v1932_v17  ;;  %v6532_v61 = vadd.f32 %v6504_v48, %v1935_v19  ;;  %v6535_v62 = vadd.f32 %v6504_v48, %v1938_v18 }
 0x41c   : > { %v6538_v63 = vadd.f32 %v6504_v48, %v1941_v21  ;;  %v6541_v0 = vadd.f32 %v6504_v48, %v1944_v20  ;;  %v6544_v1 = vadd.f32 %v6504_v48, %v1947_v23  ;;  %v6547_v2 = vadd.f32 %v6504_v48, %v1950_v22 }
 0x41d   : > { %v6550_v3 = vadd.f32 %v6504_v48, %v1953_v25  ;;  %v6553_v4 = vadd.f32 %v6504_v48, %v1956_v24  ;;  %v6556_v5 = vadd.f32 %v6504_v48, %v1959_v27  ;;  %v6559_v6 = vadd.f32 %v6504_v48, %v1962_v26 }
 0x41e   : > { %v6562_v7 = vadd.f32 %v6504_v48, %v1965_v46  ;;  %v6565_v8 = vadd.f32 %v6504_v48, %v1968_v28  ;;  %v6568_v9 = vadd.f32 %v6504_v48, %v1971_v50  ;;  %v6571_v29 = vadd.f32 %v6504_v48, %v1974_v45  ;;  %v2010_v10 = vpop.xlane.xlu1 %2009 }
 0x41f   : > { %v6574_v11 = vadd.f32 %v6504_v48, %v1977_v30  ;;  %v6577_v12 = vadd.f32 %v6504_v48, %v1980_v53  ;;  %v6580_v13 = vadd.f32 %v6504_v48, %v1983_v32  ;;  %v6583_v14 = vadd.f32 %v6504_v48, %v1986_v31 }
 0x420   : > { %v6586_v15 = vadd.f32 %v6504_v48, %v1989_v35  ;;  %v6589_v16 = vadd.f32 %v6504_v48, %v1992_v34  ;;  %v6592_v17 = vadd.f32 %v6504_v48, %v1995_v40  ;;  %v6595_v18 = vadd.f32 %v6504_v48, %v1998_v37 }
 0x421   : > { %v6598_v19 = vadd.f32 %v6504_v48, %v2004_v42  ;;  %v6601_v20 = vadd.f32 %v6504_v48, %v2001_v54  ;;  %v6604_v21 = vadd.f32 %v6504_v48, %v2010_v10  ;;  %v2132_v22 = vrot.slane %v2034_v60, %v6498_v41 }
 0x422   : > { %v2007_v23 = vpop.xlane.xlu1 %2006  ;;  %v2136_v24 = vrot.slane %v2034_v60, %v6501_v47  ;;  %v2140_v25 = vrot.slane %v2034_v60, %v6507_v49  ;;  %v2144_v26 = vrot.slane %v2034_v60, %v6510_v51  ;;  %v2148_v27 = vrot.slane %v2034_v60, %v6513_v52 }
 0x423   : > { %v6612_v28 = vadd.f32 %v6504_v48, %v2007_v23  ;;  %v2152_v46 = vrot.slane %v2034_v60, %v6516_v55  ;;  %v2156_v45 = vrot.slane %v2034_v60, %v6519_v56  ;;  %v2160_v50 = vrot.slane %v2034_v60, %v6522_v57 }
 0x424   : > { %v3170_v53 = vcombine.low %v2132_v22, %v2136_v24  ;;  %v3171_v30 = vcombine.low %v2140_v25, %v2144_v26  ;;  %v2100_v31 = vrot.slane %v6528_v59, %v6498_v41  ;;  %v2104_v32 = vrot.slane %v6528_v59, %v6501_v47 }
 0x425   : > { %v3172_v34 = vcombine.low %v2148_v27, %v2152_v46  ;;  %v3173_v35 = vcombine.low %v2156_v45, %v2160_v50  ;;  %v2108_v37 = vrot.slane %v6528_v59, %v6507_v49  ;;  %v2112_v38 = vrot.slane %v6528_v59, %v6510_v51 }
 0x426   : > { %v2016_v39 = vpop.xlane.xlu1 %2015  ;;  %v3180_v40 = vrot.slane %v3170_v53, %v6525_v58  ;;  %v3187_v42 = vrot.slane %v3171_v30, %v6525_v58  ;;  %v2116_v43 = vrot.slane %v6528_v59, %v6513_v52  ;;  %v2120_v44 = vrot.slane %v6528_v59, %v6516_v55 }
 0x427   : > { %v6632_v54 = vadd.f32 %v6504_v48, %v2016_v39  ;;  %v3194_v60 = vrot.slane %v3172_v34, %v6525_v58  ;;  %v3201_v10 = vrot.slane %v3173_v35, %v6525_v58  ;;  %v2124_v22 = vrot.slane %v6528_v59, %v6519_v56 }
 0x428   : > { %v3202_v23 = vcombine.low %v3180_v40, %v3187_v42  ;;  %v2128_v24 = vrot.slane %v6528_v59, %v6522_v57  ;;  %v3121_v25 = vcombine.low %v2100_v31, %v2104_v32  ;;  %v3122_v26 = vcombine.low %v2108_v37, %v2112_v38 }
 0x429   : > { %v3203_v27 = vcombine.low %v3194_v60, %v3201_v10  ;;  %v3123_v46 = vcombine.low %v2116_v43, %v2120_v44  ;;  %v2196_v45 = vrot.slane %v6535_v62, %v6498_v41  ;;  %v2200_v50 = vrot.slane %v6535_v62, %v6501_v47 }
 0x42a   : > { %v3210_v53 = vrot.slane %v3202_v23, %v6525_v58  ;;  %v3124_v30 = vcombine.low %v2124_v22, %v2128_v24  ;;  %v3131_v34 = vrot.slane %v3121_v25, %v6525_v58  ;;  %v3138_v35 = vrot.slane %v3122_v26, %v6525_v58  ;;  %v2013_v39 = vpop.xlane.xlu1 %2012 }
 0x42b   : > { %v3217_v59 = vrot.slane %v3203_v27, %v6525_v58  ;;  %v3145_v31 = vrot.slane %v3123_v46, %v6525_v58  ;;  %v6650_v32 = vadd.f32 %v6504_v48, %v2013_v39  ;;  %v2204_v37 = vrot.slane %v6535_v62, %v6507_v49 }
 0x42c   : > { %v3152_v38 = vrot.slane %v3124_v30, %v6525_v58  ;;  %v3153_v40 = vcombine.low %v3131_v34, %v3138_v35  ;;  %v2208_v42 = vrot.slane %v6535_v62, %v6510_v51  ;;  %v2212_v43 = vrot.slane %v6535_v62, %v6513_v52 }
 0x42d   : > { %v3218_v44 = vcombine.low %v3210_v53, %v3217_v59  ;;  %v2216_v60 = vrot.slane %v6535_v62, %v6516_v55  ;;  %v2220_v10 = vrot.slane %v6535_v62, %v6519_v56  ;;  %v2224_v22 = vrot.slane %v6535_v62, %v6522_v57 }
 0x42e   : > { %v3154_v23 = vcombine.low %v3145_v31, %v3152_v38  ;;  %v3161_v24 = vrot.slane %v3153_v40, %v6525_v58  ;;  %v3268_v25 = vcombine.low %v2196_v45, %v2200_v50  ;;  %v3269_v26 = vcombine.low %v2204_v37, %v2208_v42  ;;  %v2022_v37 = vpop.xlane.xlu1 %2021 }
 0x42f   : > { %4693 = vperm.xlu0 %5579, %v3218_v44   ;;  %v3270_v27 = vcombine.low %v2212_v43, %v2216_v60  ;;  %v3271_v46 = vcombine.low %v2220_v10, %v2224_v22  ;;  %v2612_v53 = vrot.slane %v6574_v11, %v6498_v41  ;;  %v2616_v30 = vrot.slane %v6574_v11, %v6501_v47 }
 0x430   : > { %v3168_v34 = vrot.slane %v3154_v23, %v6525_v58  ;;  %v3278_v35 = vrot.slane %v3268_v25, %v6525_v58  ;;  %v3285_v62 = vrot.slane %v3269_v26, %v6525_v58  ;;  %v2620_v39 = vrot.slane %v6574_v11, %v6507_v49 }
 0x431   : > { %v3292_v45 = vrot.slane %v3270_v27, %v6525_v58  ;;  %v3299_v50 = vrot.slane %v3271_v46, %v6525_v58  ;;  %v2624_v59 = vrot.slane %v6574_v11, %v6510_v51  ;;  %v2628_v31 = vrot.slane %v6574_v11, %v6513_v52 }
 0x432   : > { %v3169_v38 = vcombine.low %v3161_v24, %v3168_v34  ;;  %v3300_v40 = vcombine.low %v3278_v35, %v3285_v62  ;;  %v2632_v42 = vrot.slane %v6574_v11, %v6516_v55  ;;  %v2636_v43 = vrot.slane %v6574_v11, %v6519_v56 }
 0x433   : > { %v3301_v44 = vcombine.low %v3292_v45, %v3299_v50  ;;  %v2640_v60 = vrot.slane %v6574_v11, %v6522_v57  ;;  %v3905_v10 = vcombine.low %v2612_v53, %v2616_v30  ;;  %v3906_v22 = vcombine.low %v2620_v39, %v2624_v59 }
 0x434   : > { %4690 = vperm.xlu1 %5578, %v3169_v38   ;;  %v3308_v23 = vrot.slane %v3300_v40, %v6525_v58  ;;  %v3907_v25 = vcombine.low %v2628_v31, %v2632_v42  ;;  %v6689_v26 = vadd.f32 %v6504_v48, %v2022_v37  ;;  %v2164_v24 = vrot.slane %v6532_v61, %v6498_v41 }
 0x435   : > { %v3315_v27 = vrot.slane %v3301_v44, %v6525_v58  ;;  %v3908_v46 = vcombine.low %v2636_v43, %v2640_v60  ;;  %v3915_v34 = vrot.slane %v3905_v10, %v6525_v58  ;;  %v3922_v35 = vrot.slane %v3906_v22, %v6525_v58 }
 0x436   : > { %v3929_v11 = vrot.slane %v3907_v25, %v6525_v58  ;;  %v2168_v53 = vrot.slane %v6532_v61, %v6501_v47  ;;  %v2172_v30 = vrot.slane %v6532_v61, %v6507_v49  ;;  %v2176_v62 = vrot.slane %v6532_v61, %v6510_v51 }
 0x437   : > { %v3316_v39 = vcombine.low %v3308_v23, %v3315_v27  ;;  %v3936_v45 = vrot.slane %v3908_v46, %v6525_v58  ;;  %v3937_v50 = vcombine.low %v3915_v34, %v3922_v35  ;;  %v2180_v59 = vrot.slane %v6532_v61, %v6513_v52 }
 0x438   : > { %v2184_v31 = vrot.slane %v6532_v61, %v6516_v55  ;;  %v2188_v37 = vrot.slane %v6532_v61, %v6519_v56  ;;  %v2192_v38 = vrot.slane %v6532_v61, %v6522_v57  ;;  %v3219_v40 = vcombine.low %v2164_v24, %v2168_v53 }
 0x439   : > { %4699 = vperm.xlu0 %5579, %v3316_v39   ;;  %v3938_v42 = vcombine.low %v3929_v11, %v3936_v45  ;;  %v3945_v43 = vrot.slane %v3937_v50, %v6525_v58  ;;  %v3220_v44 = vcombine.low %v2172_v30, %v2176_v62  ;;  %v2708_v60 = vrot.slane %v6583_v14, %v6498_v41  ;;  %v2019_v30 = vpop.xlane.xlu1 %2018 }
 0x43a   : > { %v3221_v10 = vcombine.low %v2180_v59, %v2184_v31  ;;  %v3222_v22 = vcombine.low %v2188_v37, %v2192_v38  ;;  %v3229_v23 = vrot.slane %v3219_v40, %v6525_v58  ;;  %v2712_v25 = vrot.slane %v6583_v14, %v6501_v47 }
 0x43b   : > { %v3952_v27 = vrot.slane %v3938_v42, %v6525_v58  ;;  %v3236_v61 = vrot.slane %v3220_v44, %v6525_v58  ;;  %v2716_v24 = vrot.slane %v6583_v14, %v6507_v49  ;;  %v2720_v46 = vrot.slane %v6583_v14, %v6510_v51 }
 0x43c   : > { %v3243_v34 = vrot.slane %v3221_v10, %v6525_v58  ;;  %v3250_v35 = vrot.slane %v3222_v22, %v6525_v58  ;;  %v2724_v11 = vrot.slane %v6583_v14, %v6513_v52  ;;  %v2728_v53 = vrot.slane %v6583_v14, %v6516_v55 }
 0x43d   : > { %v3953_v62 = vcombine.low %v3945_v43, %v3952_v27  ;;  %v3251_v39 = vcombine.low %v3229_v23, %v3236_v61  ;;  %v2732_v45 = vrot.slane %v6583_v14, %v6519_v56  ;;  %v2736_v50 = vrot.slane %v6583_v14, %v6522_v57 }
 0x43e   : > { %v3252_v59 = vcombine.low %v3243_v34, %v3250_v35  ;;  %v4052_v31 = vcombine.low %v2708_v60, %v2712_v25  ;;  %v4053_v37 = vcombine.low %v2716_v24, %v2720_v46  ;;  %v4054_v38 = vcombine.low %v2724_v11, %v2728_v53 }
 0x43f   : > { %4738 = vperm.xlu1 %5578, %v3953_v62   ;;  %v3259_v40 = vrot.slane %v3251_v39, %v6525_v58  ;;  %v4055_v42 = vcombine.low %v2732_v45, %v2736_v50  ;;  %v6736_v44 = vadd.f32 %v6504_v48, %v2019_v30  ;;  %v2260_v43 = vrot.slane %v6541_v0, %v6498_v41 }
 0x440   : > { %v3266_v10 = vrot.slane %v3252_v59, %v6525_v58  ;;  %v4062_v22 = vrot.slane %v4052_v31, %v6525_v58  ;;  %v4069_v14 = vrot.slane %v4053_v37, %v6525_v58  ;;  %v4076_v60 = vrot.slane %v4054_v38, %v6525_v58 }
 0x441   : > { %v4083_v23 = vrot.slane %v4055_v42, %v6525_v58  ;;  %v2264_v25 = vrot.slane %v6541_v0, %v6501_v47  ;;  %v2268_v48 = vrot.slane %v6541_v0, %v6507_v49  ;;  %v2272_v27 = vrot.slane %v6541_v0, %v6510_v51 }
 0x442   : > { %v3267_v61 = vcombine.low %v3259_v40, %v3266_v10  ;;  %v4084_v24 = vcombine.low %v4062_v22, %v4069_v14  ;;  %v2276_v46 = vrot.slane %v6541_v0, %v6513_v52  ;;  %v2280_v34 = vrot.slane %v6541_v0, %v6516_v55 }
 0x443   : > { %v4085_v35 = vcombine.low %v4076_v60, %v4083_v23  ;;  %v2284_v11 = vrot.slane %v6541_v0, %v6519_v56  ;;  %v2288_v53 = vrot.slane %v6541_v0, %v6522_v57  ;;  %v3366_v30 = vcombine.low %v2260_v43, %v2264_v25 }
 0x444   : > { %4696 = vperm.xlu0 %5579, %v3267_v61   ;;  %v4092_v62 = vrot.slane %v4084_v24, %v6525_v58  ;;  %v3367_v39 = vcombine.low %v2268_v48, %v2272_v27  ;;  %v3368_v45 = vcombine.low %v2276_v46, %v2280_v34  ;;  %v2676_v50 = vrot.slane %v6580_v13, %v6498_v41 }
 0x445   : > { %v4099_v59 = vrot.slane %v4085_v35, %v6525_v58  ;;  %v3369_v31 = vcombine.low %v2284_v11, %v2288_v53  ;;  %v3376_v37 = vrot.slane %v3366_v30, %v6525_v58  ;;  %v2680_v38 = vrot.slane %v6580_v13, %v6501_v47 }
 0x446   : > { %v3383_v40 = vrot.slane %v3367_v39, %v6525_v58  ;;  %v3390_v0 = vrot.slane %v3368_v45, %v6525_v58  ;;  %v2684_v42 = vrot.slane %v6580_v13, %v6507_v49  ;;  %v2688_v43 = vrot.slane %v6580_v13, %v6510_v51 }
 0x447   : > { %v4100_v10 = vcombine.low %v4092_v62, %v4099_v59  ;;  %v3397_v22 = vrot.slane %v3369_v31, %v6525_v58  ;;  %v2692_v14 = vrot.slane %v6580_v13, %v6513_v52  ;;  %v2696_v60 = vrot.slane %v6580_v13, %v6516_v55 }
 0x448   : > { %v3398_v23 = vcombine.low %v3376_v37, %v3383_v40  ;;  %v2700_v25 = vrot.slane %v6580_v13, %v6519_v56  ;;  %v2704_v48 = vrot.slane %v6580_v13, %v6522_v57  ;;  %v4003_v27 = vcombine.low %v2676_v50, %v2680_v38 }
 0x449   : > { %4747 = vperm.xlu1 %5578, %v4100_v10   ;;  %v3399_v61 = vcombine.low %v3390_v0, %v3397_v22  ;;  %v4004_v24 = vcombine.low %v2684_v42, %v2688_v43  ;;  %v4005_v46 = vcombine.low %v2692_v14, %v2696_v60  ;;  %v2228_v34 = vrot.slane %v6538_v63, %v6498_v41 }
 0x44a   : > { %v3406_v35 = vrot.slane %v3398_v23, %v6525_v58  ;;  %v4006_v11 = vcombine.low %v2700_v25, %v2704_v48  ;;  %v4013_v53 = vrot.slane %v4003_v27, %v6525_v58  ;;  %v2232_v30 = vrot.slane %v6538_v63, %v6501_v47 }
 0x44b   : > { %v3413_v62 = vrot.slane %v3399_v61, %v6525_v58  ;;  %v4020_v13 = vrot.slane %v4004_v24, %v6525_v58  ;;  %v4027_v39 = vrot.slane %v4005_v46, %v6525_v58  ;;  %v2236_v45 = vrot.slane %v6538_v63, %v6507_v49 }
 0x44c   : > { %v4034_v50 = vrot.slane %v4006_v11, %v6525_v58  ;;  %v2240_v59 = vrot.slane %v6538_v63, %v6510_v51  ;;  %v2244_v31 = vrot.slane %v6538_v63, %v6513_v52  ;;  %v2248_v37 = vrot.slane %v6538_v63, %v6516_v55 }
 0x44d   : > { %v3414_v38 = vcombine.low %v3406_v35, %v3413_v62  ;;  %v4035_v40 = vcombine.low %v4013_v53, %v4020_v13  ;;  %v2252_v0 = vrot.slane %v6538_v63, %v6519_v56  ;;  %v2256_v42 = vrot.slane %v6538_v63, %v6522_v57 }
 0x44e   : > { %v4036_v43 = vcombine.low %v4027_v39, %v4034_v50  ;;  %v3317_v10 = vcombine.low %v2228_v34, %v2232_v30  ;;  %v3318_v22 = vcombine.low %v2236_v45, %v2240_v59  ;;  %v3319_v14 = vcombine.low %v2244_v31, %v2248_v37 }
 0x44f   : > { %4705 = vperm.xlu0 %5579, %v3414_v38   ;;  %v4043_v60 = vrot.slane %v4035_v40, %v6525_v58  ;;  %v3320_v23 = vcombine.low %v2252_v0, %v2256_v42  ;;  %v2772_v25 = vrot.slane %v6589_v16, %v6498_v41  ;;  %v2776_v48 = vrot.slane %v6589_v16, %v6501_v47 }
 0x450   : > { %v4050_v27 = vrot.slane %v4036_v43, %v6525_v58  ;;  %v3327_v61 = vrot.slane %v3317_v10, %v6525_v58  ;;  %v3334_v63 = vrot.slane %v3318_v22, %v6525_v58  ;;  %v3341_v24 = vrot.slane %v3319_v14, %v6525_v58 }
 0x451   : > { %v3348_v46 = vrot.slane %v3320_v23, %v6525_v58  ;;  %v2780_v34 = vrot.slane %v6589_v16, %v6507_v49  ;;  %v2784_v35 = vrot.slane %v6589_v16, %v6510_v51  ;;  %v2788_v11 = vrot.slane %v6589_v16, %v6513_v52 }
 0x452   : > { %v4051_v53 = vcombine.low %v4043_v60, %v4050_v27  ;;  %v3349_v30 = vcombine.low %v3327_v61, %v3334_v63  ;;  %v2792_v62 = vrot.slane %v6589_v16, %v6516_v55  ;;  %v2796_v13 = vrot.slane %v6589_v16, %v6519_v56 }
 0x453   : > { %v3350_v39 = vcombine.low %v3341_v24, %v3348_v46  ;;  %v2800_v45 = vrot.slane %v6589_v16, %v6522_v57  ;;  %v4150_v50 = vcombine.low %v2772_v25, %v2776_v48  ;;  %v4151_v59 = vcombine.low %v2780_v34, %v2784_v35 }
 0x454   : > { %4744 = vperm.xlu1 %5578, %v4051_v53   ;;  %v3357_v31 = vrot.slane %v3349_v30, %v6525_v58  ;;  %v4152_v37 = vcombine.low %v2788_v11, %v2792_v62  ;;  %v2324_v38 = vrot.slane %v6547_v2, %v6498_v41  ;;  %v2328_v40 = vrot.slane %v6547_v2, %v6501_v47 }
 0x455   : > { %v3364_v0 = vrot.slane %v3350_v39, %v6525_v58  ;;  %v4153_v42 = vcombine.low %v2796_v13, %v2800_v45  ;;  %v4160_v43 = vrot.slane %v4150_v50, %v6525_v58  ;;  %v4167_v10 = vrot.slane %v4151_v59, %v6525_v58 }
 0x456   : > { %v4174_v16 = vrot.slane %v4152_v37, %v6525_v58  ;;  %v2332_v22 = vrot.slane %v6547_v2, %v6507_v49  ;;  %v2336_v14 = vrot.slane %v6547_v2, %v6510_v51  ;;  %v2340_v60 = vrot.slane %v6547_v2, %v6513_v52 }
 0x457   : > { %v3365_v23 = vcombine.low %v3357_v31, %v3364_v0  ;;  %v4181_v25 = vrot.slane %v4153_v42, %v6525_v58  ;;  %v4182_v48 = vcombine.low %v4160_v43, %v4167_v10  ;;  %v2344_v27 = vrot.slane %v6547_v2, %v6516_v55 }
 0x458   : > { %v2348_v61 = vrot.slane %v6547_v2, %v6519_v56  ;;  %v2352_v63 = vrot.slane %v6547_v2, %v6522_v57  ;;  %v3464_v24 = vcombine.low %v2324_v38, %v2328_v40  ;;  %v3465_v46 = vcombine.low %v2332_v22, %v2336_v14 }
 0x459   : > { %4702 = vperm.xlu0 %5579, %v3365_v23   ;;  %v4183_v34 = vcombine.low %v4174_v16, %v4181_v25  ;;  %v4190_v35 = vrot.slane %v4182_v48, %v6525_v58  ;;  %v3466_v11 = vcombine.low %v2340_v60, %v2344_v27  ;;  %v2740_v53 = vrot.slane %v6586_v15, %v6498_v41 }
 0x45a   : > { %v3467_v30 = vcombine.low %v2348_v61, %v2352_v63  ;;  %v3474_v62 = vrot.slane %v3464_v24, %v6525_v58  ;;  %v3481_v13 = vrot.slane %v3465_v46, %v6525_v58  ;;  %v2744_v39 = vrot.slane %v6586_v15, %v6501_v47 }
 0x45b   : > { %v4197_v2 = vrot.slane %v4183_v34, %v6525_v58  ;;  %v3488_v45 = vrot.slane %v3466_v11, %v6525_v58  ;;  %v2748_v50 = vrot.slane %v6586_v15, %v6507_v49  ;;  %v2752_v59 = vrot.slane %v6586_v15, %v6510_v51 }
 0x45c   : > { %v3495_v31 = vrot.slane %v3467_v30, %v6525_v58  ;;  %v3496_v37 = vcombine.low %v3474_v62, %v3481_v13  ;;  %v2756_v38 = vrot.slane %v6586_v15, %v6513_v52  ;;  %v2760_v40 = vrot.slane %v6586_v15, %v6516_v55 }
 0x45d   : > { %v4198_v0 = vcombine.low %v4190_v35, %v4197_v2  ;;  %v2764_v42 = vrot.slane %v6586_v15, %v6519_v56  ;;  %v2768_v43 = vrot.slane %v6586_v15, %v6522_v57  ;;  %v4101_v10 = vcombine.low %v2740_v53, %v2744_v39 }
 0x45e   : > { %v3497_v16 = vcombine.low %v3488_v45, %v3495_v31  ;;  %v3504_v22 = vrot.slane %v3496_v37, %v6525_v58  ;;  %v4102_v14 = vcombine.low %v2748_v50, %v2752_v59  ;;  %v4103_v60 = vcombine.low %v2756_v38, %v2760_v40 }
 0x45f   : > { %4753 = vperm.xlu1 %5578, %v4198_v0   ;;  %v4104_v23 = vcombine.low %v2764_v42, %v2768_v43  ;;  %v4111_v25 = vrot.slane %v4101_v10, %v6525_v58  ;;  %v2292_v48 = vrot.slane %v6544_v1, %v6498_v41  ;;  %v2296_v27 = vrot.slane %v6544_v1, %v6501_v47 }
 0x460   : > { %v3511_v61 = vrot.slane %v3497_v16, %v6525_v58  ;;  %v4118_v15 = vrot.slane %v4102_v14, %v6525_v58  ;;  %v4125_v63 = vrot.slane %v4103_v60, %v6525_v58  ;;  %v2300_v24 = vrot.slane %v6544_v1, %v6507_v49 }
 0x461   : > { %v4132_v46 = vrot.slane %v4104_v23, %v6525_v58  ;;  %v2304_v34 = vrot.slane %v6544_v1, %v6510_v51  ;;  %v2308_v35 = vrot.slane %v6544_v1, %v6513_v52  ;;  %v2312_v11 = vrot.slane %v6544_v1, %v6516_v55 }
 0x462   : > { %v3512_v53 = vcombine.low %v3504_v22, %v3511_v61  ;;  %v4133_v30 = vcombine.low %v4111_v25, %v4118_v15  ;;  %v2316_v62 = vrot.slane %v6544_v1, %v6519_v56  ;;  %v2320_v13 = vrot.slane %v6544_v1, %v6522_v57 }
 0x463   : > { %v4134_v39 = vcombine.low %v4125_v63, %v4132_v46  ;;  %v3415_v2 = vcombine.low %v2292_v48, %v2296_v27  ;;  %v3416_v45 = vcombine.low %v2300_v24, %v2304_v34  ;;  %v3417_v50 = vcombine.low %v2308_v35, %v2312_v11 }
 0x464   : > { %4711 = vperm.xlu0 %5579, %v3512_v53   ;;  %v4141_v59 = vrot.slane %v4133_v30, %v6525_v58  ;;  %v3418_v31 = vcombine.low %v2316_v62, %v2320_v13  ;;  %v2836_v37 = vrot.slane %v6595_v18, %v6498_v41  ;;  %v2840_v38 = vrot.slane %v6595_v18, %v6501_v47 }
 0x465   : > { %v4148_v40 = vrot.slane %v4134_v39, %v6525_v58  ;;  %v3425_v0 = vrot.slane %v3415_v2, %v6525_v58  ;;  %v3432_v1 = vrot.slane %v3416_v45, %v6525_v58  ;;  %v3439_v42 = vrot.slane %v3417_v50, %v6525_v58 }
 0x466   : > { %v3446_v43 = vrot.slane %v3418_v31, %v6525_v58  ;;  %v2844_v10 = vrot.slane %v6595_v18, %v6507_v49  ;;  %v2848_v16 = vrot.slane %v6595_v18, %v6510_v51  ;;  %v2852_v22 = vrot.slane %v6595_v18, %v6513_v52 }
 0x467   : > { %v4149_v14 = vcombine.low %v4141_v59, %v4148_v40  ;;  %v3447_v60 = vcombine.low %v3425_v0, %v3432_v1  ;;  %v2856_v23 = vrot.slane %v6595_v18, %v6516_v55  ;;  %v2860_v25 = vrot.slane %v6595_v18, %v6519_v56 }
 0x468   : > { %v3448_v48 = vcombine.low %v3439_v42, %v3446_v43  ;;  %v2864_v27 = vrot.slane %v6595_v18, %v6522_v57  ;;  %v4248_v61 = vcombine.low %v2836_v37, %v2840_v38  ;;  %v4249_v15 = vcombine.low %v2844_v10, %v2848_v16 }
 0x469   : > { %4750 = vperm.xlu1 %5578, %v4149_v14   ;;  %v3455_v63 = vrot.slane %v3447_v60, %v6525_v58  ;;  %v4250_v24 = vcombine.low %v2852_v22, %v2856_v23  ;;  %v2388_v46 = vrot.slane %v6553_v4, %v6498_v41  ;;  %v2392_v34 = vrot.slane %v6553_v4, %v6501_v47 }
 0x46a   : > { %v3462_v35 = vrot.slane %v3448_v48, %v6525_v58  ;;  %v4251_v11 = vcombine.low %v2860_v25, %v2864_v27  ;;  %v4258_v53 = vrot.slane %v4248_v61, %v6525_v58  ;;  %v4265_v30 = vrot.slane %v4249_v15, %v6525_v58 }
 0x46b   : > { %v4272_v18 = vrot.slane %v4250_v24, %v6525_v58  ;;  %v2396_v62 = vrot.slane %v6553_v4, %v6507_v49  ;;  %v2400_v13 = vrot.slane %v6553_v4, %v6510_v51  ;;  %v2404_v39 = vrot.slane %v6553_v4, %v6513_v52 }
 0x46c   : > { %v3463_v2 = vcombine.low %v3455_v63, %v3462_v35  ;;  %v4279_v45 = vrot.slane %v4251_v11, %v6525_v58  ;;  %v4280_v50 = vcombine.low %v4258_v53, %v4265_v30  ;;  %v2408_v59 = vrot.slane %v6553_v4, %v6516_v55 }
 0x46d   : > { %v2412_v31 = vrot.slane %v6553_v4, %v6519_v56  ;;  %v2416_v37 = vrot.slane %v6553_v4, %v6522_v57  ;;  %v3562_v38 = vcombine.low %v2388_v46, %v2392_v34  ;;  %v3563_v40 = vcombine.low %v2396_v62, %v2400_v13 }
 0x46e   : > { %4708 = vperm.xlu0 %5579, %v3463_v2   ;;  %v4281_v0 = vcombine.low %v4272_v18, %v4279_v45  ;;  %v4288_v1 = vrot.slane %v4280_v50, %v6525_v58  ;;  %v3564_v42 = vcombine.low %v2404_v39, %v2408_v59  ;;  %v2804_v43 = vrot.slane %v6592_v17, %v6498_v41 }
 0x46f   : > { %v3565_v10 = vcombine.low %v2412_v31, %v2416_v37  ;;  %v3572_v16 = vrot.slane %v3562_v38, %v6525_v58  ;;  %v3579_v22 = vrot.slane %v3563_v40, %v6525_v58  ;;  %v2808_v14 = vrot.slane %v6592_v17, %v6501_v47 }
 0x470   : > { %v4295_v4 = vrot.slane %v4281_v0, %v6525_v58  ;;  %v3586_v60 = vrot.slane %v3564_v42, %v6525_v58  ;;  %v2812_v23 = vrot.slane %v6592_v17, %v6507_v49  ;;  %v2816_v25 = vrot.slane %v6592_v17, %v6510_v51 }
 0x471   : > { %v3593_v48 = vrot.slane %v3565_v10, %v6525_v58  ;;  %v3594_v27 = vcombine.low %v3572_v16, %v3579_v22  ;;  %v2820_v61 = vrot.slane %v6592_v17, %v6513_v52  ;;  %v2824_v15 = vrot.slane %v6592_v17, %v6516_v55 }
 0x472   : > { %v4296_v63 = vcombine.low %v4288_v1, %v4295_v4  ;;  %v2828_v24 = vrot.slane %v6592_v17, %v6519_v56  ;;  %v2832_v46 = vrot.slane %v6592_v17, %v6522_v57  ;;  %v4199_v34 = vcombine.low %v2804_v43, %v2808_v14 }
 0x473   : > { %v3595_v35 = vcombine.low %v3586_v60, %v3593_v48  ;;  %v3602_v11 = vrot.slane %v3594_v27, %v6525_v58  ;;  %v4200_v53 = vcombine.low %v2812_v23, %v2816_v25  ;;  %v4201_v30 = vcombine.low %v2820_v61, %v2824_v15 }
 0x474   : > { %4759 = vperm.xlu1 %5578, %v4296_v63   ;;  %v4202_v18 = vcombine.low %v2828_v24, %v2832_v46  ;;  %v4209_v62 = vrot.slane %v4199_v34, %v6525_v58  ;;  %v2356_v13 = vrot.slane %v6550_v3, %v6498_v41  ;;  %v2360_v39 = vrot.slane %v6550_v3, %v6501_v47 }
 0x475   : > { %v3609_v2 = vrot.slane %v3595_v35, %v6525_v58  ;;  %v4216_v17 = vrot.slane %v4200_v53, %v6525_v58  ;;  %v4223_v45 = vrot.slane %v4201_v30, %v6525_v58  ;;  %v2364_v50 = vrot.slane %v6550_v3, %v6507_v49 }
 0x476   : > { %v4230_v59 = vrot.slane %v4202_v18, %v6525_v58  ;;  %v2368_v31 = vrot.slane %v6550_v3, %v6510_v51  ;;  %v2372_v37 = vrot.slane %v6550_v3, %v6513_v52  ;;  %v2376_v38 = vrot.slane %v6550_v3, %v6516_v55 }
 0x477   : > { %v3610_v40 = vcombine.low %v3602_v11, %v3609_v2  ;;  %v4231_v0 = vcombine.low %v4209_v62, %v4216_v17  ;;  %v2380_v1 = vrot.slane %v6550_v3, %v6519_v56  ;;  %v2384_v42 = vrot.slane %v6550_v3, %v6522_v57 }
 0x478   : > { %v4232_v43 = vcombine.low %v4223_v45, %v4230_v59  ;;  %v3513_v10 = vcombine.low %v2356_v13, %v2360_v39  ;;  %v3514_v16 = vcombine.low %v2364_v50, %v2368_v31  ;;  %v3515_v22 = vcombine.low %v2372_v37, %v2376_v38 }
 0x479   : > { %4717 = vperm.xlu0 %5579, %v3610_v40   ;;  %v4239_v14 = vrot.slane %v4231_v0, %v6525_v58  ;;  %v3516_v4 = vcombine.low %v2380_v1, %v2384_v42  ;;  %v2900_v60 = vrot.slane %v6598_v19, %v6498_v41  ;;  %v2904_v23 = vrot.slane %v6598_v19, %v6501_v47 }
 0x47a   : > { %v4246_v25 = vrot.slane %v4232_v43, %v6525_v58  ;;  %v3523_v48 = vrot.slane %v3513_v10, %v6525_v58  ;;  %v3530_v3 = vrot.slane %v3514_v16, %v6525_v58  ;;  %v3537_v27 = vrot.slane %v3515_v22, %v6525_v58 }
 0x47b   : > { %v3544_v61 = vrot.slane %v3516_v4, %v6525_v58  ;;  %v2908_v15 = vrot.slane %v6598_v19, %v6507_v49  ;;  %v2912_v63 = vrot.slane %v6598_v19, %v6510_v51  ;;  %v2916_v24 = vrot.slane %v6598_v19, %v6513_v52 }
 0x47c   : > { %v4247_v46 = vcombine.low %v4239_v14, %v4246_v25  ;;  %v3545_v34 = vcombine.low %v3523_v48, %v3530_v3  ;;  %v2920_v35 = vrot.slane %v6598_v19, %v6516_v55  ;;  %v2924_v11 = vrot.slane %v6598_v19, %v6519_v56 }
 0x47d   : > { %v3546_v53 = vcombine.low %v3537_v27, %v3544_v61  ;;  %v2928_v30 = vrot.slane %v6598_v19, %v6522_v57  ;;  %v4346_v18 = vcombine.low %v2900_v60, %v2904_v23  ;;  %v4347_v62 = vcombine.low %v2908_v15, %v2912_v63 }
 0x47e   : > { %4756 = vperm.xlu1 %5578, %v4247_v46   ;;  %v3553_v13 = vrot.slane %v3545_v34, %v6525_v58  ;;  %v4348_v39 = vcombine.low %v2916_v24, %v2920_v35  ;;  %v2452_v2 = vrot.slane %v6559_v6, %v6498_v41  ;;  %v2456_v17 = vrot.slane %v6559_v6, %v6501_v47 }
 0x47f   : > { %v3560_v45 = vrot.slane %v3546_v53, %v6525_v58  ;;  %v4349_v50 = vcombine.low %v2924_v11, %v2928_v30  ;;  %v4356_v59 = vrot.slane %v4346_v18, %v6525_v58  ;;  %v4363_v31 = vrot.slane %v4347_v62, %v6525_v58 }
 0x480   : > { %v4370_v19 = vrot.slane %v4348_v39, %v6525_v58  ;;  %v2460_v37 = vrot.slane %v6559_v6, %v6507_v49  ;;  %v2464_v38 = vrot.slane %v6559_v6, %v6510_v51  ;;  %v2468_v40 = vrot.slane %v6559_v6, %v6513_v52 }
 0x481   : > { %v3561_v0 = vcombine.low %v3553_v13, %v3560_v45  ;;  %v4377_v1 = vrot.slane %v4349_v50, %v6525_v58  ;;  %v4378_v42 = vcombine.low %v4356_v59, %v4363_v31  ;;  %v2472_v43 = vrot.slane %v6559_v6, %v6516_v55 }
 0x482   : > { %v2476_v10 = vrot.slane %v6559_v6, %v6519_v56  ;;  %v2480_v16 = vrot.slane %v6559_v6, %v6522_v57  ;;  %v3660_v22 = vcombine.low %v2452_v2, %v2456_v17  ;;  %v3661_v14 = vcombine.low %v2460_v37, %v2464_v38 }
 0x483   : > { %4714 = vperm.xlu0 %5579, %v3561_v0   ;;  %v4379_v4 = vcombine.low %v4370_v19, %v4377_v1  ;;  %v4386_v60 = vrot.slane %v4378_v42, %v6525_v58  ;;  %v3662_v23 = vcombine.low %v2468_v40, %v2472_v43  ;;  %v2868_v25 = vrot.slane %v6601_v20, %v6498_v41 }
 0x484   : > { %v3663_v48 = vcombine.low %v2476_v10, %v2480_v16  ;;  %v3670_v3 = vrot.slane %v3660_v22, %v6525_v58  ;;  %v3677_v27 = vrot.slane %v3661_v14, %v6525_v58  ;;  %v2872_v61 = vrot.slane %v6601_v20, %v6501_v47 }
 0x485   : > { %v4393_v6 = vrot.slane %v4379_v4, %v6525_v58  ;;  %v3684_v15 = vrot.slane %v3662_v23, %v6525_v58  ;;  %v2876_v63 = vrot.slane %v6601_v20, %v6507_v49  ;;  %v2880_v24 = vrot.slane %v6601_v20, %v6510_v51 }
 0x486   : > { %v3691_v46 = vrot.slane %v3663_v48, %v6525_v58  ;;  %v3692_v34 = vcombine.low %v3670_v3, %v3677_v27  ;;  %v2884_v35 = vrot.slane %v6601_v20, %v6513_v52  ;;  %v2888_v11 = vrot.slane %v6601_v20, %v6516_v55 }
 0x487   : > { %v4394_v53 = vcombine.low %v4386_v60, %v4393_v6  ;;  %v2892_v30 = vrot.slane %v6601_v20, %v6519_v56  ;;  %v2896_v18 = vrot.slane %v6601_v20, %v6522_v57  ;;  %v4297_v62 = vcombine.low %v2868_v25, %v2872_v61 }
 0x488   : > { %v3693_v13 = vcombine.low %v3684_v15, %v3691_v46  ;;  %v3700_v39 = vrot.slane %v3692_v34, %v6525_v58  ;;  %v4298_v2 = vcombine.low %v2876_v63, %v2880_v24  ;;  %v4299_v17 = vcombine.low %v2884_v35, %v2888_v11 }
 0x489   : > { %4765 = vperm.xlu1 %5578, %v4394_v53   ;;  %v4300_v45 = vcombine.low %v2892_v30, %v2896_v18  ;;  %v4307_v50 = vrot.slane %v4297_v62, %v6525_v58  ;;  %v2420_v59 = vrot.slane %v6556_v5, %v6498_v41  ;;  %v2424_v31 = vrot.slane %v6556_v5, %v6501_v47 }
 0x48a   : > { %v3707_v19 = vrot.slane %v3693_v13, %v6525_v58  ;;  %v4314_v20 = vrot.slane %v4298_v2, %v6525_v58  ;;  %v4321_v37 = vrot.slane %v4299_v17, %v6525_v58  ;;  %v2428_v38 = vrot.slane %v6556_v5, %v6507_v49 }
 0x48b   : > { %v4328_v40 = vrot.slane %v4300_v45, %v6525_v58  ;;  %v2432_v0 = vrot.slane %v6556_v5, %v6510_v51  ;;  %v2436_v1 = vrot.slane %v6556_v5, %v6513_v52  ;;  %v2440_v42 = vrot.slane %v6556_v5, %v6516_v55 }
 0x48c   : > { %v3708_v43 = vcombine.low %v3700_v39, %v3707_v19  ;;  %v4329_v10 = vcombine.low %v4307_v50, %v4314_v20  ;;  %v2444_v16 = vrot.slane %v6556_v5, %v6519_v56  ;;  %v2448_v22 = vrot.slane %v6556_v5, %v6522_v57 }
 0x48d   : > { %v4330_v14 = vcombine.low %v4321_v37, %v4328_v40  ;;  %v3611_v4 = vcombine.low %v2420_v59, %v2424_v31  ;;  %v3612_v60 = vcombine.low %v2428_v38, %v2432_v0  ;;  %v3613_v23 = vcombine.low %v2436_v1, %v2440_v42 }
 0x48e   : > { %4723 = vperm.xlu0 %5579, %v3708_v43   ;;  %v4337_v25 = vrot.slane %v4329_v10, %v6525_v58  ;;  %v3614_v48 = vcombine.low %v2444_v16, %v2448_v22  ;;  %v2964_v3 = vrot.slane %v6604_v21, %v6498_v41  ;;  %v2968_v27 = vrot.slane %v6604_v21, %v6501_v47 }
 0x48f   : > { %v4344_v61 = vrot.slane %v4330_v14, %v6525_v58  ;;  %v3621_v6 = vrot.slane %v3611_v4, %v6525_v58  ;;  %v3628_v5 = vrot.slane %v3612_v60, %v6525_v58  ;;  %v3635_v15 = vrot.slane %v3613_v23, %v6525_v58 }
 0x490   : > { %v3642_v63 = vrot.slane %v3614_v48, %v6525_v58  ;;  %v2972_v24 = vrot.slane %v6604_v21, %v6507_v49  ;;  %v2976_v46 = vrot.slane %v6604_v21, %v6510_v51  ;;  %v2980_v34 = vrot.slane %v6604_v21, %v6513_v52 }
 0x491   : > { %v4345_v35 = vcombine.low %v4337_v25, %v4344_v61  ;;  %v3643_v11 = vcombine.low %v3621_v6, %v3628_v5  ;;  %v2984_v53 = vrot.slane %v6604_v21, %v6516_v55  ;;  %v2988_v30 = vrot.slane %v6604_v21, %v6519_v56 }
 0x492   : > { %v3644_v18 = vcombine.low %v3635_v15, %v3642_v63  ;;  %v2992_v62 = vrot.slane %v6604_v21, %v6522_v57  ;;  %v4444_v13 = vcombine.low %v2964_v3, %v2968_v27  ;;  %v4445_v39 = vcombine.low %v2972_v24, %v2976_v46 }
 0x493   : > { %4762 = vperm.xlu1 %5578, %v4345_v35   ;;  %v3651_v2 = vrot.slane %v3643_v11, %v6525_v58  ;;  %v4446_v17 = vcombine.low %v2980_v34, %v2984_v53  ;;  %v2644_v45 = vrot.slane %v6577_v12, %v6498_v41  ;;  %v2648_v50 = vrot.slane %v6577_v12, %v6501_v47 }
 0x494   : > { %v3658_v59 = vrot.slane %v3644_v18, %v6525_v58  ;;  %v4447_v31 = vcombine.low %v2988_v30, %v2992_v62  ;;  %v4454_v19 = vrot.slane %v4444_v13, %v6525_v58  ;;  %v4461_v20 = vrot.slane %v4445_v39, %v6525_v58 }
 0x495   : > { %v4468_v21 = vrot.slane %v4446_v17, %v6525_v58  ;;  %v2652_v37 = vrot.slane %v6577_v12, %v6507_v49  ;;  %v2656_v38 = vrot.slane %v6577_v12, %v6510_v51  ;;  %v2660_v40 = vrot.slane %v6577_v12, %v6513_v52 }
 0x496   : > { %v3659_v0 = vcombine.low %v3651_v2, %v3658_v59  ;;  %v4475_v1 = vrot.slane %v4447_v31, %v6525_v58  ;;  %v4476_v42 = vcombine.low %v4454_v19, %v4461_v20  ;;  %v2664_v43 = vrot.slane %v6577_v12, %v6516_v55 }
 0x497   : > { %v2668_v10 = vrot.slane %v6577_v12, %v6519_v56  ;;  %v2672_v16 = vrot.slane %v6577_v12, %v6522_v57  ;;  %v3954_v22 = vcombine.low %v2644_v45, %v2648_v50  ;;  %v3955_v14 = vcombine.low %v2652_v37, %v2656_v38 }
 0x498   : > { %4720 = vperm.xlu0 %5579, %v3659_v0   ;;  %v4477_v4 = vcombine.low %v4468_v21, %v4475_v1  ;;  %v4484_v60 = vrot.slane %v4476_v42, %v6525_v58  ;;  %v3956_v23 = vcombine.low %v2660_v40, %v2664_v43  ;;  %v2932_v25 = vrot.slane %v6612_v28, %v6498_v41 }
 0x499   : > { %v3957_v48 = vcombine.low %v2668_v10, %v2672_v16  ;;  %v3964_v3 = vrot.slane %v3954_v22, %v6525_v58  ;;  %v3971_v27 = vrot.slane %v3955_v14, %v6525_v58  ;;  %v2936_v61 = vrot.slane %v6612_v28, %v6501_v47 }
 0x49a   : > { %v4491_v12 = vrot.slane %v4477_v4, %v6525_v58  ;;  %v3978_v6 = vrot.slane %v3956_v23, %v6525_v58  ;;  %v2940_v5 = vrot.slane %v6612_v28, %v6507_v49  ;;  %v2944_v15 = vrot.slane %v6612_v28, %v6510_v51 }
 0x49b   : > { %v3985_v63 = vrot.slane %v3957_v48, %v6525_v58  ;;  %v3986_v24 = vcombine.low %v3964_v3, %v3971_v27  ;;  %v2948_v46 = vrot.slane %v6612_v28, %v6513_v52  ;;  %v2952_v34 = vrot.slane %v6612_v28, %v6516_v55 }
 0x49c   : > { %v4492_v35 = vcombine.low %v4484_v60, %v4491_v12  ;;  %v2956_v11 = vrot.slane %v6612_v28, %v6519_v56  ;;  %v2960_v53 = vrot.slane %v6612_v28, %v6522_v57  ;;  %v4395_v30 = vcombine.low %v2932_v25, %v2936_v61 }
 0x49d   : > { %v3987_v18 = vcombine.low %v3978_v6, %v3985_v63  ;;  %v3994_v62 = vrot.slane %v3986_v24, %v6525_v58  ;;  %v4396_v13 = vcombine.low %v2940_v5, %v2944_v15  ;;  %v4397_v39 = vcombine.low %v2948_v46, %v2952_v34 }
 0x49e   : > { %4771 = vperm.xlu1 %5578, %v4492_v35   ;;  %v4398_v2 = vcombine.low %v2956_v11, %v2960_v53  ;;  %v4405_v17 = vrot.slane %v4395_v30, %v6525_v58  ;;  %v2484_v45 = vrot.slane %v6562_v7, %v6498_v41  ;;  %v2488_v50 = vrot.slane %v6562_v7, %v6501_v47 }
 0x49f   : > { %v4001_v59 = vrot.slane %v3987_v18, %v6525_v58  ;;  %v4412_v28 = vrot.slane %v4396_v13, %v6525_v58  ;;  %v4419_v31 = vrot.slane %v4397_v39, %v6525_v58  ;;  %v2492_v19 = vrot.slane %v6562_v7, %v6507_v49 }
 0x4a0   : > { %v4426_v20 = vrot.slane %v4398_v2, %v6525_v58  ;;  %v2496_v21 = vrot.slane %v6562_v7, %v6510_v51  ;;  %v2500_v37 = vrot.slane %v6562_v7, %v6513_v52  ;;  %v2504_v38 = vrot.slane %v6562_v7, %v6516_v55 }
 0x4a1   : > { %v4002_v40 = vcombine.low %v3994_v62, %v4001_v59  ;;  %v4427_v0 = vcombine.low %v4405_v17, %v4412_v28  ;;  %v2508_v1 = vrot.slane %v6562_v7, %v6519_v56  ;;  %v2512_v42 = vrot.slane %v6562_v7, %v6522_v57 }
 0x4a2   : > { %v4428_v43 = vcombine.low %v4419_v31, %v4426_v20  ;;  %v3709_v10 = vcombine.low %v2484_v45, %v2488_v50  ;;  %v3710_v16 = vcombine.low %v2492_v19, %v2496_v21  ;;  %v3711_v22 = vcombine.low %v2500_v37, %v2504_v38 }
 0x4a3   : > { %4741 = vperm.xlu0 %5579, %v4002_v40   ;;  %v4435_v14 = vrot.slane %v4427_v0, %v6525_v58  ;;  %v3712_v4 = vcombine.low %v2508_v1, %v2512_v42  ;;  %v3028_v60 = vrot.slane %v6632_v54, %v6498_v41  ;;  %v3032_v23 = vrot.slane %v6632_v54, %v6501_v47 }
 0x4a4   : > { %v4442_v25 = vrot.slane %v4428_v43, %v6525_v58  ;;  %v3719_v48 = vrot.slane %v3709_v10, %v6525_v58  ;;  %v3726_v7 = vrot.slane %v3710_v16, %v6525_v58  ;;  %v3733_v3 = vrot.slane %v3711_v22, %v6525_v58 }
 0x4a5   : > { %v3740_v27 = vrot.slane %v3712_v4, %v6525_v58  ;;  %v3036_v61 = vrot.slane %v6632_v54, %v6507_v49  ;;  %v3040_v12 = vrot.slane %v6632_v54, %v6510_v51  ;;  %v3044_v6 = vrot.slane %v6632_v54, %v6513_v52 }
 0x4a6   : > { %v4443_v5 = vcombine.low %v4435_v14, %v4442_v25  ;;  %v3741_v15 = vcombine.low %v3719_v48, %v3726_v7  ;;  %v3048_v63 = vrot.slane %v6632_v54, %v6516_v55  ;;  %v3052_v24 = vrot.slane %v6632_v54, %v6519_v56 }
 0x4a7   : > { %v3742_v46 = vcombine.low %v3733_v3, %v3740_v27  ;;  %v3056_v34 = vrot.slane %v6632_v54, %v6522_v57  ;;  %v4542_v35 = vcombine.low %v3028_v60, %v3032_v23  ;;  %v4543_v11 = vcombine.low %v3036_v61, %v3040_v12 }
 0x4a8   : > { %4768 = vperm.xlu1 %5578, %v4443_v5   ;;  %v3749_v53 = vrot.slane %v3741_v15, %v6525_v58  ;;  %v4544_v30 = vcombine.low %v3044_v6, %v3048_v63  ;;  %v2516_v18 = vrot.slane %v6565_v8, %v6498_v41  ;;  %v2520_v62 = vrot.slane %v6565_v8, %v6501_v47 }
 0x4a9   : > { %v3756_v13 = vrot.slane %v3742_v46, %v6525_v58  ;;  %v4545_v39 = vcombine.low %v3052_v24, %v3056_v34  ;;  %v4552_v2 = vrot.slane %v4542_v35, %v6525_v58  ;;  %v4559_v17 = vrot.slane %v4543_v11, %v6525_v58 }
 0x4aa   : > { %v4566_v54 = vrot.slane %v4544_v30, %v6525_v58  ;;  %v2524_v45 = vrot.slane %v6565_v8, %v6507_v49  ;;  %v2528_v50 = vrot.slane %v6565_v8, %v6510_v51  ;;  %v2532_v59 = vrot.slane %v6565_v8, %v6513_v52 }
 0x4ab   : > { %v3757_v28 = vcombine.low %v3749_v53, %v3756_v13  ;;  %v4573_v31 = vrot.slane %v4545_v39, %v6525_v58  ;;  %v4574_v19 = vcombine.low %v4552_v2, %v4559_v17  ;;  %v2536_v20 = vrot.slane %v6565_v8, %v6516_v55 }
 0x4ac   : > { %v2540_v21 = vrot.slane %v6565_v8, %v6519_v56  ;;  %v2544_v37 = vrot.slane %v6565_v8, %v6522_v57  ;;  %v3758_v38 = vcombine.low %v2516_v18, %v2520_v62  ;;  %v3759_v40 = vcombine.low %v2524_v45, %v2528_v50 }
 0x4ad   : > { %4726 = vperm.xlu0 %5579, %v3757_v28   ;;  %v4575_v0 = vcombine.low %v4566_v54, %v4573_v31  ;;  %v4582_v1 = vrot.slane %v4574_v19, %v6525_v58  ;;  %v3760_v42 = vcombine.low %v2532_v59, %v2536_v20  ;;  %v2996_v43 = vrot.slane %v6650_v32, %v6498_v41 }
 0x4ae   : > { %v3761_v10 = vcombine.low %v2540_v21, %v2544_v37  ;;  %v3768_v16 = vrot.slane %v3758_v38, %v6525_v58  ;;  %v3775_v22 = vrot.slane %v3759_v40, %v6525_v58  ;;  %v3000_v14 = vrot.slane %v6650_v32, %v6501_v47 }
 0x4af   : > { %v4589_v8 = vrot.slane %v4575_v0, %v6525_v58  ;;  %v3782_v4 = vrot.slane %v3760_v42, %v6525_v58  ;;  %v3004_v60 = vrot.slane %v6650_v32, %v6507_v49  ;;  %v3008_v23 = vrot.slane %v6650_v32, %v6510_v51 }
 0x4b0   : > { %v3789_v25 = vrot.slane %v3761_v10, %v6525_v58  ;;  %v3790_v48 = vcombine.low %v3768_v16, %v3775_v22  ;;  %v3012_v7 = vrot.slane %v6650_v32, %v6513_v52  ;;  %v3016_v3 = vrot.slane %v6650_v32, %v6516_v55 }
 0x4b1   : > { %v4590_v27 = vcombine.low %v4582_v1, %v4589_v8  ;;  %v3020_v61 = vrot.slane %v6650_v32, %v6519_v56  ;;  %v3024_v12 = vrot.slane %v6650_v32, %v6522_v57  ;;  %v4493_v6 = vcombine.low %v2996_v43, %v3000_v14 }
 0x4b2   : > { %v3791_v5 = vcombine.low %v3782_v4, %v3789_v25  ;;  %v3798_v15 = vrot.slane %v3790_v48, %v6525_v58  ;;  %v4494_v63 = vcombine.low %v3004_v60, %v3008_v23  ;;  %v4495_v24 = vcombine.low %v3012_v7, %v3016_v3 }
 0x4b3   : > { %4777 = vperm.xlu1 %5578, %v4590_v27   ;;  %v4496_v46 = vcombine.low %v3020_v61, %v3024_v12  ;;  %v4503_v34 = vrot.slane %v4493_v6, %v6525_v58  ;;  %v2548_v35 = vrot.slane %v6568_v9, %v6498_v41  ;;  %v2552_v11 = vrot.slane %v6568_v9, %v6501_v47 }
 0x4b4   : > { %v3805_v53 = vrot.slane %v3791_v5, %v6525_v58  ;;  %v4510_v32 = vrot.slane %v4494_v63, %v6525_v58  ;;  %v4517_v30 = vrot.slane %v4495_v24, %v6525_v58  ;;  %v2556_v18 = vrot.slane %v6568_v9, %v6507_v49 }
 0x4b5   : > { %v4524_v62 = vrot.slane %v4496_v46, %v6525_v58  ;;  %v2560_v13 = vrot.slane %v6568_v9, %v6510_v51  ;;  %v2564_v39 = vrot.slane %v6568_v9, %v6513_v52  ;;  %v2568_v2 = vrot.slane %v6568_v9, %v6516_v55 }
 0x4b6   : > { %v3806_v17 = vcombine.low %v3798_v15, %v3805_v53  ;;  %v4525_v54 = vcombine.low %v4503_v34, %v4510_v32  ;;  %v2572_v45 = vrot.slane %v6568_v9, %v6519_v56  ;;  %v2576_v50 = vrot.slane %v6568_v9, %v6522_v57 }
 0x4b7   : > { %v4526_v59 = vcombine.low %v4517_v30, %v4524_v62  ;;  %v3807_v28 = vcombine.low %v2548_v35, %v2552_v11  ;;  %v3808_v31 = vcombine.low %v2556_v18, %v2560_v13  ;;  %v3809_v19 = vcombine.low %v2564_v39, %v2568_v2 }
 0x4b8   : > { %4729 = vperm.xlu0 %5579, %v3806_v17   ;;  %v4533_v20 = vrot.slane %v4525_v54, %v6525_v58  ;;  %v3810_v21 = vcombine.low %v2572_v45, %v2576_v50  ;;  %v3060_v37 = vrot.slane %v6736_v44, %v6498_v41  ;;  %v3064_v38 = vrot.slane %v6736_v44, %v6501_v47 }
 0x4b9   : > { %v4540_v40 = vrot.slane %v4526_v59, %v6525_v58  ;;  %v3817_v0 = vrot.slane %v3807_v28, %v6525_v58  ;;  %v3824_v9 = vrot.slane %v3808_v31, %v6525_v58  ;;  %v3831_v1 = vrot.slane %v3809_v19, %v6525_v58 }
 0x4ba   : > { %v3838_v42 = vrot.slane %v3810_v21, %v6525_v58  ;;  %v3068_v43 = vrot.slane %v6736_v44, %v6507_v49  ;;  %v3072_v10 = vrot.slane %v6736_v44, %v6510_v51  ;;  %v3076_v16 = vrot.slane %v6736_v44, %v6513_v52 }
 0x4bb   : > { %v4541_v22 = vcombine.low %v4533_v20, %v4540_v40  ;;  %v3839_v14 = vcombine.low %v3817_v0, %v3824_v9  ;;  %v3080_v8 = vrot.slane %v6736_v44, %v6516_v55  ;;  %v3084_v4 = vrot.slane %v6736_v44, %v6519_v56 }
 0x4bc   : > { %v3840_v60 = vcombine.low %v3831_v1, %v3838_v42  ;;  %v3088_v23 = vrot.slane %v6736_v44, %v6522_v57  ;;  %v4591_v25 = vcombine.low %v3060_v37, %v3064_v38  ;;  %v4592_v48 = vcombine.low %v3068_v43, %v3072_v10 }
 0x4bd   : > { %4774 = vperm.xlu1 %5578, %v4541_v22   ;;  %v3847_v7 = vrot.slane %v3839_v14, %v6525_v58  ;;  %v4593_v3 = vcombine.low %v3076_v16, %v3080_v8  ;;  %v2580_v27 = vrot.slane %v6571_v29, %v6498_v41  ;;  %v2584_v61 = vrot.slane %v6571_v29, %v6501_v47 }
 0x4be   : > { %v3854_v12 = vrot.slane %v3840_v60, %v6525_v58  ;;  %v4594_v6 = vcombine.low %v3084_v4, %v3088_v23  ;;  %v4601_v5 = vrot.slane %v4591_v25, %v6525_v58  ;;  %v4608_v15 = vrot.slane %v4592_v48, %v6525_v58  ;;  %v4694_v4 = vpop.permute.xlu0 %4693  ;;  %v4691_v48 = vpop.permute.xlu1 %4690 }
 0x4bf   : > { %v4615_v44 = vrot.slane %v4593_v3, %v6525_v58  ;;  %v2588_v63 = vrot.slane %v6571_v29, %v6507_v49  ;;  %v2592_v24 = vrot.slane %v6571_v29, %v6510_v51  ;;  %v2596_v46 = vrot.slane %v6571_v29, %v6513_v52 }
 0x4c0   : > { %v3855_v34 = vcombine.low %v3847_v7, %v3854_v12  ;;  %v4622_v35 = vrot.slane %v4594_v6, %v6525_v58  ;;  %v4623_v11 = vcombine.low %v4601_v5, %v4608_v15  ;;  %v2600_v53 = vrot.slane %v6571_v29, %v6516_v55 }
 0x4c1   : > { %v2604_v32 = vrot.slane %v6571_v29, %v6519_v56  ;;  %v2608_v30 = vrot.slane %v6571_v29, %v6522_v57  ;;  %v3856_v18 = vcombine.low %v2580_v27, %v2584_v61  ;;  %v3857_v62 = vcombine.low %v2588_v63, %v2592_v24 }
 0x4c2   : > { %4732 = vperm.xlu0 %5579, %v3855_v34   ;;  %v4624_v13 = vcombine.low %v4615_v44, %v4622_v35  ;;  %v4631_v39 = vrot.slane %v4623_v11, %v6525_v58  ;;  %v3858_v2 = vcombine.low %v2596_v46, %v2600_v53  ;;  %v3092_v17 = vrot.slane %v6689_v26, %v6498_v41  ;;  %v7317_v60 = vpop.permute.xlu0 %4699  ;;  %v4739_v3 = vpop.permute.xlu1 %4738 }
 0x4c3   : > { %v3859_v54 = vcombine.low %v2604_v32, %v2608_v30  ;;  %v3866_v45 = vrot.slane %v3856_v18, %v6525_v58  ;;  %v3873_v50 = vrot.slane %v3857_v62, %v6525_v58  ;;  %v3096_v59 = vrot.slane %v6689_v26, %v6501_v47 }
 0x4c4   : > { %v4638_v29 = vrot.slane %v4624_v13, %v6525_v58  ;;  %v3880_v28 = vrot.slane %v3858_v2, %v6525_v58  ;;  %v3100_v31 = vrot.slane %v6689_v26, %v6507_v49  ;;  %v3104_v19 = vrot.slane %v6689_v26, %v6510_v51 }
 0x4c5   : > { %v3887_v41 = vrot.slane %v3859_v54, %v6525_v58  ;;  %v3888_v20 = vcombine.low %v3866_v45, %v3873_v50  ;;  %v3108_v21 = vrot.slane %v6689_v26, %v6513_v52  ;;  %v3112_v37 = vrot.slane %v6689_v26, %v6516_v55 }
 0x4c6   : > { %v4639_v47 = vcombine.low %v4631_v39, %v4638_v29  ;;  %v3116_v38 = vrot.slane %v6689_v26, %v6519_v56  ;;  %v3120_v40 = vrot.slane %v6689_v26, %v6522_v57  ;;  %v4640_v49 = vcombine.low %v3092_v17, %v3096_v59  ;;  %v7319_v23 = vpop.permute.xlu0 %4696  ;;  %v4748_v61 = vpop.permute.xlu1 %4747 }
 0x4c7   : > { %v3889_v0 = vcombine.low %v3880_v28, %v3887_v41  ;;  %v3896_v51 = vrot.slane %v3888_v20, %v6525_v58  ;;  %v4641_v9 = vcombine.low %v3100_v31, %v3104_v19  ;;  %v4642_v1 = vcombine.low %v3108_v21, %v3112_v37 }
 0x4c8   : > { %4780 = vperm.xlu1 %5578, %v4639_v47   ;;  %v4643_v42 = vcombine.low %v3116_v38, %v3120_v40  ;;  %v4650_v52 = vrot.slane %v4640_v49, %v6525_v58  ;;  %v7336_v34 = vand.u32 127, %v2029_v33 }
 0x4c9   : > { %v3903_v43 = vrot.slane %v3889_v0, %v6525_v58  ;;  %v4657_v55 = vrot.slane %v4641_v9, %v6525_v58  ;;  %v4664_v10 = vrot.slane %v4642_v1, %v6525_v58 }
 0x4ca   : > { %v4671_v56 = vrot.slane %v4643_v42, %v6525_v58  ;;  %v7321_v25 = vpop.permute.xlu0 %4705  ;;  %v4791_v53 = vadd.s32 4294967288, %v7336_v34  ;;  %v4798_v18 = vadd.s32 4294967280, %v7336_v34  ;;  %v4789_v13 = vsub.s32 %v7336_v34, %v6495_v36 }
 0x4cb   : > { %v3904_v16 = vcombine.low %v3896_v51, %v3903_v43  ;;  %v4672_v57 = vcombine.low %v4650_v52, %v4657_v55  ;;  %v4805_v2 = vadd.s32 4294967272, %v7336_v34  ;;  %v4812_v59 = vadd.s32 4294967264, %v7336_v34 }
 0x4cc   : > { %v4673_v26 = vcombine.low %v4664_v10, %v4671_v56  ;;  %v4794_v30 = vsub.s32 %v4791_v53, %v6495_v36  ;;  %v4899_v17 = vrot.slane %v4739_v3, %v4789_v13  ;;  %v4801_v54 = vsub.s32 %v4798_v18, %v6495_v36 }
 0x4cd   : > { %4735 = vperm.xlu0 %5579, %v3904_v16   ;;  %v4680_v22 = vrot.slane %v4672_v57, %v6525_v58  ;;  %v4808_v28 = vsub.s32 %v4805_v2, %v6495_v36  ;;  %v4819_v41 = vadd.s32 4294967256, %v7336_v34  ;;  %v4815_v20 = vsub.s32 %v4812_v59, %v6495_v36 }
 0x4ce   : > { %v4687_v14 = vrot.slane %v4673_v26, %v6525_v58  ;;  %v4826_v47 = vadd.s32 4294967248, %v7336_v34  ;;  %v4795_v0 = vrot.slane %v4694_v4, %v4794_v30  ;;  %v4790_v51 = vrot.slane %v4691_v48, %v4789_v13 }
 0x4cf   : > { %v4745_v6 = vpop.permute.xlu1 %4744  ;;  %v4913_v19 = vrot.slane %v4748_v61, %v4808_v28  ;;  %v4822_v40 = vsub.s32 %v4819_v41, %v6495_v36  ;;  %v4833_v1 = vadd.s32 4294967240, %v7336_v34  ;;  %v4802_v42 = vrot.slane %v7319_v23, %v4801_v54 }
 0x4d0   : > { %v4688_v8 = vcombine.low %v4680_v22, %v4687_v14  ;;  %v4908_v50 = vrot.slane %v4745_v6, %v4801_v54  ;;  %v4829_v52 = vsub.s32 %v4826_v47, %v6495_v36  ;;  %v4840_v10 = vadd.s32 4294967232, %v7336_v34 }
 0x4d1   : > { %v4797_v16 = vsel %vm4796_vm1, %v4795_v0, %v4790_v51  ;;  %v4836_v57 = vsub.s32 %v4833_v1, %v6495_v36  ;;  %v4809_v4 = vrot.slane %v7317_v60, %v4808_v28  ;;  %v4847_v48 = vadd.s32 4294967224, %v7336_v34 }
 0x4d2   : > { %4783 = vperm.xlu1 %5578, %v4688_v8   ;;  %v4804_v22 = vsel %vm4803_vm2, %v4802_v42, %v4797_v16  ;;  %v4843_v3 = vsub.s32 %v4840_v10, %v6495_v36  ;;  %v4823_v60 = vrot.slane %v7321_v25, %v4822_v40  ;;  %v4868_v25 = vadd.s32 4294967200, %v7336_v34 }
 0x4d3   : > { %v4811_v61 = vsel %vm4810_vm3, %v4809_v4, %v4804_v22 }
 0x4d4   : > { %v7323_v7 = vpop.permute.xlu0 %4702 }
 0x4d5   : > { %v4816_v14 = vrot.slane %v7323_v7, %v4815_v20  ;;  %v4854_v7 = vadd.s32 4294967216, %v7336_v34 }
 0x4da   : > { %v4754_v15 = vpop.permute.xlu1 %4753 }
 0x4db   : > { %v4923_v9 = vrot.slane %v4754_v15, %v4822_v40  ;;  %v4818_v15 = vsel %vm4817_vm4, %v4816_v14, %v4811_v61 }
 0x4dc   : > { %v4825_v18 = vsel %vm4824_vm5, %v4823_v60, %v4818_v15 }
 0x4df   : > { %v7325_v27 = vpop.permute.xlu0 %4711 }
 0x4e0   : > { %v4837_v54 = vrot.slane %v7325_v27, %v4836_v57 }
 0x4e4   : > { %v4751_v63 = vpop.permute.xlu1 %4750 }
 0x4e5   : > { %v4918_v37 = vrot.slane %v4751_v63, %v4815_v20 }
 0x4e9   : > { %v7327_v12 = vpop.permute.xlu0 %4708 }
 0x4ea   : > { %v4830_v63 = vrot.slane %v7327_v12, %v4829_v52 }
 0x4ec   : > { %v4832_v12 = vsel %vm4831_vm6, %v4830_v63, %v4825_v18 }
 0x4ef   : > { %v4760_v46 = vpop.permute.xlu1 %4759 }
 0x4f0   : > { %v4933_v23 = vrot.slane %v4760_v46, %v4836_v57  ;;  %v4850_v46 = vsub.s32 %v4847_v48, %v6495_v36 }
 0x4f4   : > { %v7329_v5 = vpop.permute.xlu0 %4717 }
 0x4f9   : > { %v4757_v11 = vpop.permute.xlu1 %4756 }
 0x4fa   : > { %v4928_v55 = vrot.slane %v4757_v11, %v4829_v52 }
 0x4fe   : > { %v7331_v44 = vpop.permute.xlu0 %4714 }
 0x4ff   : > { %v4844_v2 = vrot.slane %v7331_v44, %v4843_v3 }
 0x504   : > { %v7343_v62 = vpop.permute.xlu1 %4765 }
 0x505   : > { %v4943_v13 = vrot.slane %v7343_v62, %v4850_v46  ;;  %v4882_v62 = vadd.s32 4294967184, %v7336_v34 }
 0x507   : > { %v4885_v40 = vsub.s32 %v4882_v62, %v6495_v36 }
 0x509   : > { %v7333_v24 = vpop.permute.xlu0 %4723 }
 0x50e   : > { %v4763_v29 = vpop.permute.xlu1 %4762 }
 0x50f   : > { %v4938_v11 = vrot.slane %v4763_v29, %v4843_v3  ;;  %v4839_v29 = vsel %vm4838_vm7, %v4837_v54, %v4832_v12 }
 0x510   : > { %v4846_v41 = vsel %vm4845_vm8, %v4844_v2, %v4839_v29 }
 0x513   : > { %v7338_v35 = vpop.permute.xlu0 %4720 }
 0x519   : > { %v7357_v38 = vpop.permute.xlu1 %4771 }
 0x51e   : > { %v4742_v32 = vpop.permute.xlu0 %4741 }
 0x51f   : > { %v4903_v39 = vrot.slane %v4742_v32, %v4794_v30 }
 0x521   : > { %v4904_v45 = vsel %vm4796_vm1, %v4903_v39, %v4899_v17  ;;  %v4861_v39 = vadd.s32 4294967208, %v7336_v34  ;;  %v4857_v17 = vsub.s32 %v4854_v7, %v6495_v36 }
 0x522   : > { %v4909_v31 = vsel %vm4803_vm2, %v4908_v50, %v4904_v45 }
 0x523   : > { %v4914_v21 = vsel %vm4810_vm3, %v4913_v19, %v4909_v31  ;;  %v4769_v56 = vpop.permute.xlu1 %4768  ;;  %v4864_v28 = vsub.s32 %v4861_v39, %v6495_v36  ;;  %v4875_v31 = vadd.s32 4294967192, %v7336_v34  ;;  %v4889_v19 = vadd.s32 4294967176, %v7336_v34 }
 0x524   : > { %v4919_v49 = vsel %vm4817_vm4, %v4918_v37, %v4914_v21  ;;  %v4948_v50 = vrot.slane %v4769_v56, %v4857_v17  ;;  %v4858_v27 = vrot.slane %v7338_v35, %v4857_v17  ;;  %v4871_v21 = vsub.s32 %v4868_v25, %v6495_v36 }
 0x525   : > { %v4924_v43 = vsel %vm4824_vm5, %v4923_v9, %v4919_v49  ;;  %v4851_v37 = vrot.slane %v7329_v5, %v4850_v46  ;;  %v4953_v47 = vrot.slane %v7357_v38, %v4864_v28  ;;  %v4878_v34 = vsub.s32 %v4875_v31, %v6495_v36 }
 0x526   : > { %v4929_v8 = vsel %vm4831_vm6, %v4928_v55, %v4924_v43  ;;  %v4892_v35 = vsub.s32 %v4889_v19, %v6495_v36  ;;  %v4865_v38 = vrot.slane %v7333_v24, %v4864_v28 }
 0x527   : > { %v4934_v6 = vsel %vm4838_vm7, %v4933_v23, %v4929_v8  ;;  %v4853_v49 = vsel %vm4852_vm9, %v4851_v37, %v4846_v41 }
 0x528   : > { %v7368_v26 = vpop.permute.xlu0 %4726  ;;  %v4939_v30 = vsel %vm4845_vm8, %v4938_v11, %v4934_v6  ;;  %v4860_v51 = vsel %vm4859_vm10, %v4858_v27, %v4853_v49 }
 0x529   : > { %v4944_v45 = vsel %vm4852_vm9, %v4943_v13, %v4939_v30  ;;  %v4872_v9 = vrot.slane %v7368_v26, %v4871_v21  ;;  %v4867_v10 = vsel %vm4866_vm11, %v4865_v38, %v4860_v51 }
 0x52a   : > { %v4949_v20 = vsel %vm4859_vm10, %v4948_v50, %v4944_v45 }
 0x52b   : > { %v4954_v0 = vsel %vm4866_vm11, %v4953_v47, %v4949_v20  ;;  %v4874_v16 = vsel %vm4873_vm12, %v4872_v9, %v4867_v10 }
 0x52e   : > { %v4778_v53 = vpop.permute.xlu1 %4777 }
 0x52f   : > { %v4963_v56 = vrot.slane %v4778_v53, %v4878_v34 }
 0x533   : > { %v4730_v32 = vpop.permute.xlu0 %4729 }
 0x534   : > { %v4879_v42 = vrot.slane %v4730_v32, %v4878_v34 }
 0x536   : > { %v4881_v26 = vsel %vm4880_vm13, %v4879_v42, %v4874_v16 }
 0x538   : > { %v4775_v59 = vpop.permute.xlu1 %4774 }
 0x539   : > { %v4958_v1 = vrot.slane %v4775_v59, %v4871_v21 }
 0x53b   : > { %v4959_v43 = vsel %vm4873_vm12, %v4958_v1, %v4954_v0 }
 0x53c   : > { %v4964_v22 = vsel %vm4880_vm13, %v4963_v56, %v4959_v43 }
 0x53d   : > { %v4733_v44 = vpop.permute.xlu0 %4732 }
 0x53e   : > { %v4886_v55 = vrot.slane %v4733_v44, %v4885_v40 }
 0x540   : > { %v4888_v24 = vsel %vm4887_vm14, %v4886_v55, %v4881_v26 }
 0x543   : > { %v4781_v5 = vpop.permute.xlu1 %4780 }
 0x544   : > { %v4968_v57 = vrot.slane %v4781_v5, %v4885_v40 }
 0x546   : > { %v4969_v23 = vsel %vm4887_vm14, %v4968_v57, %v4964_v22 }
 0x548   : > { %v4736_v52 = vpop.permute.xlu0 %4735 }
 0x549   : > { %v4893_v36 = vrot.slane %v4736_v52, %v4892_v35 }
 0x54b   : > { %v4895_v8 = vsel %vm4894_vm15, %v4893_v36, %v4888_v24 }
 0x54d   : > { %v4784_v14 = vpop.permute.xlu1 %4783 }
 0x54e   : > { %v4973_v4 = vrot.slane %v4784_v14, %v4892_v35 }
 0x550   : > { %v4974_v48 = vsel %vm4894_vm15, %v4973_v4, %v4969_v23 }
 0x551   : > { %v4975_v3 = vcombine.low %v4895_v8, %v4974_v48 }
 0x553   : > { %v4982_v61 = vrot.slane %v4975_v3, %v6525_v58 }
 0x555   : > { %v4989_v6 = vrot.slane %v4982_v61, %v6525_v58 }
 0x557   : > { %4995 = vst.msk [vmem:[%s274_s25] sm:$0x3] %vm4993_vm0, %v4989_v6 }
 0x558   : > { %5849 = shalt.err (!%p5846_p3)
}
 0x559   : > { %s5850_s20 = scalar_lea.hbm %s5009_s9, 32  ;;  %s5854_s22 = scalar_lea.hbm %s7457_s7, 96 }
 0x55a   : > { %p5851_p4 = scmp.ne.s32.totalorder %s5009_s9, %s5850_s20  ;;  %p5855_p9 = scmp.lt.s32.totalorder %s5009_s9, %s7457_s7 }
 0x55b   : > { %p5856_p10 = scmp.lt.s32.totalorder %s5854_s22, %s5850_s20 }
 0x55c   : > { %p5852_p7 = pnand %p5851_p4, %p5980_p5 }
 0x55d   : > { %p5857_p11 = por %p5856_p10, %p5855_p9 }
 0x55e   : > { %p5853_p8 = pneg %p5852_p7 }
 0x560   : > { %p5858_p12 = pnand %p5857_p11, %p5853_p8 }
 0x562   : > { %5861 = shalt.err (!%p5858_p12)
}
 0x563   : > { %5532 = dma.vmem_to_hbm [thread:$0]  (%p5980_p5), %s5012_s19, 32, %s5009_s9, %s4997_s10  }
 0x564 PF: > { %p5538_p13 = scmp.ge.s32.totalorder %s5896_s29, 2  ;;  %s5023_s25 = sand.u32 1, %s5884_s26  }
 0x565   : > { %s5024_s6 = scalar_lea.sflag [#allocation4], %s5023_s25 }
 0x566   : > { %p5535_p0 = pnand %p5538_p13, %p5984_p6 }
 0x568   : > { %p5536_p1 = pneg %p5535_p0 }
 0x56a   : > { %5879 = dma.done.wait (%p5536_p1), %s5024_s6, 32  }
 0x56b   : > { %5881 = vsyncadd (%p5536_p1), %s5024_s6, 4294967264  ;;  %p19_p2 = scmp.ge.s32.totalorder %s5968_s8, 5   ;;  %s7460_s26 = smov %s5888_s27 }
 0x56c   : > { %s7461_s27 = smov %s5892_s28  ;;  %s7462_s28 = smov %s5978_s11 }
 0x56d   : > { %s7463_s29 = smov %s5968_s8  ;;  %21 = sbr.rel (!%p19_p2) target bundleno = 6 (0x6), region = 87 }
 0x572   :  { %5029 = vsyncpa [#allocation4], 1 }
 0x573   :  { %5031 = vsyncpa [#allocation4 + $0x1], 1 }

</bundles_post_ra>
